<compile_context>
chip_gen: v7x
topology: tpu7x:2x2x1
jax: 0.10.0
libtpu: 0.0.40
codegen_flags: <defaults>
</compile_context>

<pallas_src>
import functools

import jax
import jax.numpy as jnp
from jax.experimental import pallas as pl
from jax.experimental.pallas import tpu as pltpu


def _mbconv_kernel(x_ref,
                   w_exp_ref, bn1_b_ref,
                   mw_ref, bn2_b_ref,
                   w_se1_ref, b_se1_ref, w_se2_ref, b_se2_ref,
                   w_proj_ref, bn3_b_ref,
                   out_ref,
                   *, K, pad_lo, W, use_residual, has_expand):
    """One batch-block of MBConv; activations are lane-dense (bb, C, H*W) slabs."""
    bb, cin, HW = x_ref.shape
    hid = mw_ref.shape[1]
    reduce_dim = w_se1_ref.shape[0]

    x = x_ref[...].astype(jnp.float32)                       # (bb, cin, HW)

    # ---- expand: 1x1 conv (BN1 scale folded into weights) + bias + Swish.
    #      K=cin contraction is degenerate -> VPU broadcast-FMAs, not the MXU.
    if has_expand:
        h = None
        for c in range(cin):
            term = x[:, c:c + 1, :] * w_exp_ref[c][None]     # (bb,1,HW)*(1,hid,1)
            h = term if h is None else h + term
        h = h + bn1_b_ref[...]
        h = h * jax.nn.sigmoid(h)                            # Swish
    else:
        h = x                                                # cin == hid (asserted in wrapper)

    # ---- depthwise KxK conv (stride 1, "same" padding): XLU lane rolls on
    #      register-resident data; mask * weight * BN2-scale pre-folded into mw,
    #      so each tap is a single FMA.
    h2d = h.reshape(bb * hid, HW)
    acc = None
    t = 0
    for kh in range(K):
        dh = kh - pad_lo
        for kw in range(K):
            dw = kw - pad_lo
            s = dh * W + dw                     # flat H*W offset of this tap
            # pltpu.roll follows jnp.roll: result[p] = h[p - shift]; with
            # shift = (-s) % HW this reads h[p + s]; out-of-image wraps are
            # zeroed by the mask folded into mw[t].
            shifted = h2d if s == 0 else pltpu.roll(h2d, (-s) % HW, axis=1)
            contrib = shifted.reshape(bb, hid, HW) * mw_ref[t][None]
            acc = contrib if acc is None else acc + contrib
            t += 1
    acc = acc + bn2_b_ref[...]
    acc = acc * jax.nn.sigmoid(acc)                          # Swish

    # ---- squeeze-excitation: pure VPU/XLU/EUP reductions + broadcasts
    #      (the (1,hid)x(hid,r) matmuls are degenerate; skip the MXU).
    pooled = jnp.mean(acc, axis=2, keepdims=True)            # (bb, hid, 1)
    gate_pre = None
    for r in range(reduce_dim):
        s_r = jnp.sum(pooled * w_se1_ref[r][None], axis=1, keepdims=True)  # (bb,1,1)
        s_r = s_r + b_se1_ref[r][None]
        s_r = s_r * jax.nn.sigmoid(s_r)                      # Swish
        contrib = s_r * w_se2_ref[r][None]                   # (bb, hid, 1)
        gate_pre = contrib if gate_pre is None else gate_pre + contrib
    gate = jax.nn.sigmoid(gate_pre + b_se2_ref[...])         # (bb, hid, 1)
    h2 = acc * gate                                          # lane broadcast

    # ---- project: 1x1 conv (BN3 scale folded into weights) + bias.
    y = None
    for d in range(hid):
        term = h2[:, d:d + 1, :] * w_proj_ref[d][None]       # (bb,1,HW)*(1,cout,1)
        y = term if y is None else y + term
    y = y + bn3_b_ref[...]

    if use_residual:
        y = y + x                            # eval-mode drop_connect == identity
    out_ref[...] = y.astype(out_ref.dtype)


def _depthwise_masks(K, pad_lo, H, W):
    """Per-tap validity masks for the 'same'-padded depthwise conv, (K*K, H*W) f32."""
    pos = jnp.arange(H * W, dtype=jnp.int32)
    row, col = pos // W, pos % W
    masks = []
    for kh in range(K):
        dh = kh - pad_lo
        for kw in range(K):
            dw = kw - pad_lo
            m = ((row + dh >= 0) & (row + dh < H) &
                 (col + dw >= 0) & (col + dw < W))
            masks.append(m)
    return jnp.stack(masks).astype(jnp.float32)


def mbconv_forward(x_nchw, params, *, kernel_size=3, stride=1, use_residual=True,
                   images_per_block=32):
    """MBConvBlock forward (eval mode).  Accepts/returns NCHW (pure reshapes only)."""
    assert stride == 1  # TODO(synk): stride=2 output subsampling not implemented in-kernel
    B, Cin, H, W = x_nchw.shape
    HW = H * W
    K = kernel_size
    f32 = jnp.float32

    has_expand = params.get("w_exp", None) is not None
    hid = params["w_dw"].shape[-1]
    Cout = params["w_proj"].shape[-1]
    if not has_expand:
        assert Cin == hid, "expand_ratio == 1 requires in_c == hidden_dim"
    if use_residual:
        assert Cin == Cout
    pad = max(K - stride, 0)
    pad_lo = pad // 2

    # Batch-block size: keep the grid >= 2 blocks whenever B >= 2 so the
    # "parallel" axis can shard across v7x's two TensorCores; then take the
    # largest divisor of B under the cap to amortize per-grid-step overhead.
    bb = max(1, min(images_per_block, B // 2 if B >= 2 else B))
    while B % bb:
        bb -= 1

    x = x_nchw.reshape(B, Cin, HW).astype(f32)   # NCHW -> (B, C, H*W): layout-free reshape

    # --- wrapper-side constant folding: BN scales into conv weights, border
    #     masks into the depthwise weights; per-channel vectors as (1, C, 1).
    if has_expand:
        bn1_s = jnp.asarray(params["bn1_scale"], f32).reshape(-1)           # (hid,)
        bn1_b = jnp.asarray(params["bn1_bias"], f32).reshape(1, hid, 1)
        w_exp = (jnp.asarray(params["w_exp"], f32) * bn1_s[None, :]
                 ).reshape(Cin, hid, 1)                                      # (Cin, hid, 1)
    else:
        w_exp = jnp.zeros((1, 1, 1), f32)        # unused dummies (kernel skips expand)
        bn1_b = jnp.zeros((1, 1, 1), f32)

    bn2_s = jnp.asarray(params["bn2_scale"], f32).reshape(-1)                # (hid,)
    bn2_b = jnp.asarray(params["bn2_bias"], f32).reshape(1, hid, 1)
    w_dw = jnp.asarray(params["w_dw"], f32).reshape(K * K, hid) * bn2_s[None, :]
    mw = w_dw[:, :, None] * _depthwise_masks(K, pad_lo, H, W)[:, None, :]    # (K*K, hid, HW)

    w_se1 = jnp.asarray(params["w_se1"], f32).T.reshape(-1, hid, 1)          # (reduce, hid, 1)
    b_se1 = jnp.asarray(params["b_se1"], f32).reshape(-1, 1, 1)              # (reduce, 1, 1)
    w_se2 = jnp.asarray(params["w_se2"], f32).reshape(-1, hid, 1)            # (reduce, hid, 1)
    b_se2 = jnp.asarray(params["b_se2"], f32).reshape(1, hid, 1)

    bn3_s = jnp.asarray(params["bn3_scale"], f32).reshape(-1)                # (Cout,)
    bn3_b = jnp.asarray(params["bn3_bias"], f32).reshape(1, Cout, 1)
    w_proj = (jnp.asarray(params["w_proj"], f32) * bn3_s[None, :]
              ).reshape(hid, Cout, 1)                                        # (hid, Cout, 1)

    consts = [w_exp, bn1_b, mw, bn2_b, w_se1, b_se1, w_se2, b_se2, w_proj, bn3_b]

    def full_spec(a):
        nd = a.ndim
        return pl.BlockSpec(a.shape, lambda i, _nd=nd: (0,) * _nd)

    kernel = functools.partial(_mbconv_kernel, K=K, pad_lo=pad_lo, W=W,
                               use_residual=use_residual, has_expand=has_expand)

    y = pl.pallas_call(
        kernel,
        out_shape=jax.ShapeDtypeStruct((B, Cout, HW), f32),
        grid=(B // bb,),
        in_specs=[pl.BlockSpec((bb, Cin, HW), lambda i: (i, 0, 0))]
                 + [full_spec(a) for a in consts],
        out_specs=pl.BlockSpec((bb, Cout, HW), lambda i: (i, 0, 0)),
        compiler_params=pltpu.CompilerParams(
            dimension_semantics=("parallel",)),   # independent batch blocks (v7x: 2 TCs)
    )(x, *consts)
    return y.reshape(B, Cout, H, W)


def mbconv_reference(x_nchw, params, *, kernel_size=3, use_residual=True):
    """Pure-JAX reference for correctness checking (same math, no Pallas)."""
    x = jnp.transpose(x_nchw, (0, 2, 3, 1)).astype(jnp.float32)
    B, H, W, Cin = x.shape
    K = kernel_size
    pad = K - 1
    pad_lo = pad // 2
    pad_hi = pad - pad_lo

    if params.get("w_exp", None) is not None:
        h = jnp.einsum("bhwc,cd->bhwd", x, params["w_exp"])
        h = h * params["bn1_scale"][0] + params["bn1_bias"][0]
        h = h * jax.nn.sigmoid(h)
    else:
        h = x

    hp = jnp.pad(h, ((0, 0), (pad_lo, pad_hi), (pad_lo, pad_hi), (0, 0)))
    acc = jnp.zeros_like(h)
    for kh in range(K):
        for kw in range(K):
            acc = acc + hp[:, kh:kh + H, kw:kw + W, :] * params["w_dw"][kh, kw]
    acc = acc * params["bn2_scale"][0] + params["bn2_bias"][0]
    acc = acc * jax.nn.sigmoid(acc)

    pooled = jnp.mean(acc, axis=(1, 2))                        # (B, hid)
    s = pooled @ params["w_se1"] + params["b_se1"]
    s = s * jax.nn.sigmoid(s)
    s = s @ params["w_se2"] + params["b_se2"]
    gate = jax.nn.sigmoid(s)
    h2 = acc * gate[:, None, None, :]

    y = jnp.einsum("bhwc,cd->bhwd", h2, params["w_proj"])
    y = y * params["bn3_scale"][0] + params["bn3_bias"][0]
    if use_residual:
        y = y + x
    return jnp.transpose(y, (0, 3, 1, 2))


if __name__ == "__main__":
    B, Cin, H, W = 2, 4, 16, 16
    kernel_size, stride = 3, 1
    out_c = Cin
    reduce_dim = max(1, Cin // 4)                    # 1
    eps = 1e-5

    key = jax.random.PRNGKey(0)
    ks = jax.random.split(key, 40)

    def bn_fold(kg, kb, km, kv, c):
        gamma = 1.0 + 0.1 * jax.random.normal(kg, (c,), jnp.float32)
        beta = 0.1 * jax.random.normal(kb, (c,), jnp.float32)
        mean = 0.1 * jax.random.normal(km, (c,), jnp.float32)
        var = 1.0 + 0.1 * jax.random.uniform(kv, (c,), jnp.float32)
        scale = gamma / jnp.sqrt(var + eps)
        bias = beta - mean * scale
        return scale[None, :], bias[None, :]

    def check(params, x, tag):
        y = mbconv_forward(x, params, kernel_size=kernel_size, stride=stride,
                           use_residual=True)
        y = jax.block_until_ready(y)
        y_ref = mbconv_reference(x, params, kernel_size=kernel_size, use_residual=True)
        assert y.shape == y_ref.shape, (tag, y.shape, y_ref.shape)
        max_err = float(jnp.max(jnp.abs(y - y_ref)))
        assert jnp.allclose(y, y_ref, atol=2e-3, rtol=2e-3), f"{tag}: max_err={max_err}"

    # --- MBConvBlock(in_c=4, out_c=4, expand_ratio=4, kernel_size=3, stride=1)
    hid = Cin * 4                                    # 16
    params = {
        "w_exp": 0.3 * jax.random.normal(ks[0], (Cin, hid), jnp.float32),
        "w_dw": 0.3 * jax.random.normal(ks[1], (kernel_size, kernel_size, hid), jnp.float32),
        "w_se1": 0.3 * jax.random.normal(ks[2], (hid, reduce_dim), jnp.float32),
        "b_se1": 0.1 * jax.random.normal(ks[3], (1, reduce_dim), jnp.float32),
        "w_se2": 0.3 * jax.random.normal(ks[4], (reduce_dim, hid), jnp.float32),
        "b_se2": 0.1 * jax.random.normal(ks[5], (1, hid), jnp.float32),
        "w_proj": 0.3 * jax.random.normal(ks[6], (hid, out_c), jnp.float32),
    }
    params["bn1_scale"], params["bn1_bias"] = bn_fold(ks[7], ks[8], ks[9], ks[10], hid)
    params["bn2_scale"], params["bn2_bias"] = bn_fold(ks[11], ks[12], ks[13], ks[14], hid)
    params["bn3_scale"], params["bn3_bias"] = bn_fold(ks[15], ks[16], ks[17], ks[18], out_c)
    x = jax.random.normal(ks[19], (B, Cin, H, W), jnp.float32)
    check(params, x, "expand_ratio=4")

    # --- MBConvBlock(in_c=4, out_c=4, expand_ratio=1, ...): no expand conv.
    hid1 = Cin
    params1 = {
        "w_dw": 0.3 * jax.random.normal(ks[20], (kernel_size, kernel_size, hid1), jnp.float32),
        "w_se1": 0.3 * jax.random.normal(ks[21], (hid1, reduce_dim), jnp.float32),
        "b_se1": 0.1 * jax.random.normal(ks[22], (1, reduce_dim), jnp.float32),
        "w_se2": 0.3 * jax.random.normal(ks[23], (reduce_dim, hid1), jnp.float32),
        "b_se2": 0.1 * jax.random.normal(ks[24], (1, hid1), jnp.float32),
        "w_proj": 0.3 * jax.random.normal(ks[25], (hid1, out_c), jnp.float32),
    }
    params1["bn2_scale"], params1["bn2_bias"] = bn_fold(ks[26], ks[27], ks[28], ks[29], hid1)
    params1["bn3_scale"], params1["bn3_bias"] = bn_fold(ks[30], ks[31], ks[32], ks[33], out_c)
    x1 = jax.random.normal(ks[34], (B, Cin, H, W), jnp.float32)
    check(params1, x1, "expand_ratio=1")

    print("KERNEL_OK")
</pallas_src>

<mosaic_0001>
module attributes {stable_mosaic.version = 11 : i64} {
  func.func @_mbconv_kernel(%arg0: i32, %arg1: memref<1x4x256xf32, #tpu.memory_space<vmem>>, %arg2: memref<4x16x1xf32, #tpu.memory_space<vmem>>, %arg3: memref<1x16x1xf32, #tpu.memory_space<vmem>>, %arg4: memref<9x16x256xf32, #tpu.memory_space<vmem>>, %arg5: memref<1x16x1xf32, #tpu.memory_space<vmem>>, %arg6: memref<1x16x1xf32, #tpu.memory_space<vmem>>, %arg7: memref<1x1x1xf32, #tpu.memory_space<vmem>>, %arg8: memref<1x16x1xf32, #tpu.memory_space<vmem>>, %arg9: memref<1x16x1xf32, #tpu.memory_space<vmem>>, %arg10: memref<16x4x1xf32, #tpu.memory_space<vmem>>, %arg11: memref<1x4x1xf32, #tpu.memory_space<vmem>>, %arg12: memref<1x4x256xf32, #tpu.memory_space<vmem>>) attributes {dimension_semantics = [#tpu.dimension_semantics<parallel>], iteration_bounds = array<i64: 2>, scalar_prefetch = 0 : i64, scratch_operands = 0 : i64, tpu.core_type = #tpu.core_type<tc>, window_params = [{transform_indices = @transform_0, window_bounds = array<i64: 1, 4, 256>}, {pipeline_mode = #tpu.pipeline_mode<synchronous>, transform_indices = @transform_1, window_bounds = array<i64: 4, 16, 1>}, {pipeline_mode = #tpu.pipeline_mode<synchronous>, transform_indices = @transform_2, window_bounds = array<i64: 1, 16, 1>}, {pipeline_mode = #tpu.pipeline_mode<synchronous>, transform_indices = @transform_3, window_bounds = array<i64: 9, 16, 256>}, {pipeline_mode = #tpu.pipeline_mode<synchronous>, transform_indices = @transform_4, window_bounds = array<i64: 1, 16, 1>}, {pipeline_mode = #tpu.pipeline_mode<synchronous>, transform_indices = @transform_5, window_bounds = array<i64: 1, 16, 1>}, {pipeline_mode = #tpu.pipeline_mode<synchronous>, transform_indices = @transform_6, window_bounds = array<i64: 1, 1, 1>}, {pipeline_mode = #tpu.pipeline_mode<synchronous>, transform_indices = @transform_7, window_bounds = array<i64: 1, 16, 1>}, {pipeline_mode = #tpu.pipeline_mode<synchronous>, transform_indices = @transform_8, window_bounds = array<i64: 1, 16, 1>}, {pipeline_mode = #tpu.pipeline_mode<synchronous>, transform_indices = @transform_9, window_bounds = array<i64: 16, 4, 1>}, {pipeline_mode = #tpu.pipeline_mode<synchronous>, transform_indices = @transform_10, window_bounds = array<i64: 1, 4, 1>}, {transform_indices = @transform_11, window_bounds = array<i64: 1, 4, 256>}]} {
    %c0 = arith.constant 0 : index
    %c0_0 = arith.constant 0 : index
    %c0_1 = arith.constant 0 : index
    %0 = vector.load %arg1[%c0, %c0_0, %c0_1] : memref<1x4x256xf32, #tpu.memory_space<vmem>>, vector<1x4x256xf32>
    %1 = vector.extract_strided_slice %0 {offsets = [0, 0, 0], sizes = [1, 1, 256], strides = [1, 1, 1]} : vector<1x4x256xf32> to vector<1x1x256xf32>
    %c0_2 = arith.constant 0 : index
    %c0_3 = arith.constant 0 : index
    %c0_4 = arith.constant 0 : index
    %2 = vector.load %arg2[%c0_2, %c0_3, %c0_4] : memref<4x16x1xf32, #tpu.memory_space<vmem>>, vector<1x16x1xf32>
    %3 = vector.shape_cast %2 : vector<1x16x1xf32> to vector<16x1xf32>
    %4 = vector.shape_cast %3 : vector<16x1xf32> to vector<1x16x1xf32>
    %5 = vector.broadcast %1 : vector<1x1x256xf32> to vector<1x16x256xf32>
    %6 = vector.broadcast %4 : vector<1x16x1xf32> to vector<1x16x256xf32>
    %7 = arith.mulf %5, %6 : vector<1x16x256xf32>
    %8 = vector.extract_strided_slice %0 {offsets = [0, 1, 0], sizes = [1, 1, 256], strides = [1, 1, 1]} : vector<1x4x256xf32> to vector<1x1x256xf32>
    %c1 = arith.constant 1 : index
    %c0_5 = arith.constant 0 : index
    %c0_6 = arith.constant 0 : index
    %9 = vector.load %arg2[%c1, %c0_5, %c0_6] : memref<4x16x1xf32, #tpu.memory_space<vmem>>, vector<1x16x1xf32>
    %10 = vector.shape_cast %9 : vector<1x16x1xf32> to vector<16x1xf32>
    %11 = vector.shape_cast %10 : vector<16x1xf32> to vector<1x16x1xf32>
    %12 = vector.broadcast %8 : vector<1x1x256xf32> to vector<1x16x256xf32>
    %13 = vector.broadcast %11 : vector<1x16x1xf32> to vector<1x16x256xf32>
    %14 = arith.mulf %12, %13 : vector<1x16x256xf32>
    %15 = arith.addf %7, %14 : vector<1x16x256xf32>
    %16 = vector.extract_strided_slice %0 {offsets = [0, 2, 0], sizes = [1, 1, 256], strides = [1, 1, 1]} : vector<1x4x256xf32> to vector<1x1x256xf32>
    %c2 = arith.constant 2 : index
    %c0_7 = arith.constant 0 : index
    %c0_8 = arith.constant 0 : index
    %17 = vector.load %arg2[%c2, %c0_7, %c0_8] : memref<4x16x1xf32, #tpu.memory_space<vmem>>, vector<1x16x1xf32>
    %18 = vector.shape_cast %17 : vector<1x16x1xf32> to vector<16x1xf32>
    %19 = vector.shape_cast %18 : vector<16x1xf32> to vector<1x16x1xf32>
    %20 = vector.broadcast %16 : vector<1x1x256xf32> to vector<1x16x256xf32>
    %21 = vector.broadcast %19 : vector<1x16x1xf32> to vector<1x16x256xf32>
    %22 = arith.mulf %20, %21 : vector<1x16x256xf32>
    %23 = arith.addf %15, %22 : vector<1x16x256xf32>
    %24 = vector.extract_strided_slice %0 {offsets = [0, 3, 0], sizes = [1, 1, 256], strides = [1, 1, 1]} : vector<1x4x256xf32> to vector<1x1x256xf32>
    %c3 = arith.constant 3 : index
    %c0_9 = arith.constant 0 : index
    %c0_10 = arith.constant 0 : index
    %25 = vector.load %arg2[%c3, %c0_9, %c0_10] : memref<4x16x1xf32, #tpu.memory_space<vmem>>, vector<1x16x1xf32>
    %26 = vector.shape_cast %25 : vector<1x16x1xf32> to vector<16x1xf32>
    %27 = vector.shape_cast %26 : vector<16x1xf32> to vector<1x16x1xf32>
    %28 = vector.broadcast %24 : vector<1x1x256xf32> to vector<1x16x256xf32>
    %29 = vector.broadcast %27 : vector<1x16x1xf32> to vector<1x16x256xf32>
    %30 = arith.mulf %28, %29 : vector<1x16x256xf32>
    %31 = arith.addf %23, %30 : vector<1x16x256xf32>
    %c0_11 = arith.constant 0 : index
    %c0_12 = arith.constant 0 : index
    %c0_13 = arith.constant 0 : index
    %32 = vector.load %arg3[%c0_11, %c0_12, %c0_13] : memref<1x16x1xf32, #tpu.memory_space<vmem>>, vector<1x16x1xf32>
    %33 = vector.broadcast %32 : vector<1x16x1xf32> to vector<1x16x256xf32>
    %34 = arith.addf %31, %33 : vector<1x16x256xf32>
    %35 = arith.negf %34 : vector<1x16x256xf32>
    %36 = math.exp %35 : vector<1x16x256xf32>
    %cst = arith.constant 1.000000e+00 : f32
    %37 = vector.broadcast %cst : f32 to vector<1x16x256xf32>
    %38 = arith.addf %37, %36 : vector<1x16x256xf32>
    %39 = arith.divf %37, %38 : vector<1x16x256xf32>
    %40 = arith.mulf %34, %39 : vector<1x16x256xf32>
    %41 = vector.shape_cast %40 : vector<1x16x256xf32> to vector<16x256xf32>
    %c17_i32 = arith.constant 17 : i32
    %42 = tpu.dynamic_rotate %41 by %c17_i32 dim 1 : vector<16x256xf32>, i32 -> vector<16x256xf32>
    %43 = vector.shape_cast %42 : vector<16x256xf32> to vector<1x16x256xf32>
    %c0_14 = arith.constant 0 : index
    %c0_15 = arith.constant 0 : index
    %c0_16 = arith.constant 0 : index
    %44 = vector.load %arg4[%c0_14, %c0_15, %c0_16] : memref<9x16x256xf32, #tpu.memory_space<vmem>>, vector<1x16x256xf32>
    %45 = vector.shape_cast %44 : vector<1x16x256xf32> to vector<16x256xf32>
    %46 = vector.shape_cast %45 : vector<16x256xf32> to vector<1x16x256xf32>
    %47 = arith.mulf %43, %46 : vector<1x16x256xf32>
    %c16_i32 = arith.constant 16 : i32
    %48 = tpu.dynamic_rotate %41 by %c16_i32 dim 1 : vector<16x256xf32>, i32 -> vector<16x256xf32>
    %49 = vector.shape_cast %48 : vector<16x256xf32> to vector<1x16x256xf32>
    %c1_17 = arith.constant 1 : index
    %c0_18 = arith.constant 0 : index
    %c0_19 = arith.constant 0 : index
    %50 = vector.load %arg4[%c1_17, %c0_18, %c0_19] : memref<9x16x256xf32, #tpu.memory_space<vmem>>, vector<1x16x256xf32>
    %51 = vector.shape_cast %50 : vector<1x16x256xf32> to vector<16x256xf32>
    %52 = vector.shape_cast %51 : vector<16x256xf32> to vector<1x16x256xf32>
    %53 = arith.mulf %49, %52 : vector<1x16x256xf32>
    %54 = arith.addf %47, %53 : vector<1x16x256xf32>
    %c15_i32 = arith.constant 15 : i32
    %55 = tpu.dynamic_rotate %41 by %c15_i32 dim 1 : vector<16x256xf32>, i32 -> vector<16x256xf32>
    %56 = vector.shape_cast %55 : vector<16x256xf32> to vector<1x16x256xf32>
    %c2_20 = arith.constant 2 : index
    %c0_21 = arith.constant 0 : index
    %c0_22 = arith.constant 0 : index
    %57 = vector.load %arg4[%c2_20, %c0_21, %c0_22] : memref<9x16x256xf32, #tpu.memory_space<vmem>>, vector<1x16x256xf32>
    %58 = vector.shape_cast %57 : vector<1x16x256xf32> to vector<16x256xf32>
    %59 = vector.shape_cast %58 : vector<16x256xf32> to vector<1x16x256xf32>
    %60 = arith.mulf %56, %59 : vector<1x16x256xf32>
    %61 = arith.addf %54, %60 : vector<1x16x256xf32>
    %c1_i32 = arith.constant 1 : i32
    %62 = tpu.dynamic_rotate %41 by %c1_i32 dim 1 : vector<16x256xf32>, i32 -> vector<16x256xf32>
    %63 = vector.shape_cast %62 : vector<16x256xf32> to vector<1x16x256xf32>
    %c3_23 = arith.constant 3 : index
    %c0_24 = arith.constant 0 : index
    %c0_25 = arith.constant 0 : index
    %64 = vector.load %arg4[%c3_23, %c0_24, %c0_25] : memref<9x16x256xf32, #tpu.memory_space<vmem>>, vector<1x16x256xf32>
    %65 = vector.shape_cast %64 : vector<1x16x256xf32> to vector<16x256xf32>
    %66 = vector.shape_cast %65 : vector<16x256xf32> to vector<1x16x256xf32>
    %67 = arith.mulf %63, %66 : vector<1x16x256xf32>
    %68 = arith.addf %61, %67 : vector<1x16x256xf32>
    %69 = vector.shape_cast %41 : vector<16x256xf32> to vector<1x16x256xf32>
    %c4 = arith.constant 4 : index
    %c0_26 = arith.constant 0 : index
    %c0_27 = arith.constant 0 : index
    %70 = vector.load %arg4[%c4, %c0_26, %c0_27] : memref<9x16x256xf32, #tpu.memory_space<vmem>>, vector<1x16x256xf32>
    %71 = vector.shape_cast %70 : vector<1x16x256xf32> to vector<16x256xf32>
    %72 = vector.shape_cast %71 : vector<16x256xf32> to vector<1x16x256xf32>
    %73 = arith.mulf %69, %72 : vector<1x16x256xf32>
    %74 = arith.addf %68, %73 : vector<1x16x256xf32>
    %c255_i32 = arith.constant 255 : i32
    %75 = tpu.dynamic_rotate %41 by %c255_i32 dim 1 : vector<16x256xf32>, i32 -> vector<16x256xf32>
    %76 = vector.shape_cast %75 : vector<16x256xf32> to vector<1x16x256xf32>
    %c5 = arith.constant 5 : index
    %c0_28 = arith.constant 0 : index
    %c0_29 = arith.constant 0 : index
    %77 = vector.load %arg4[%c5, %c0_28, %c0_29] : memref<9x16x256xf32, #tpu.memory_space<vmem>>, vector<1x16x256xf32>
    %78 = vector.shape_cast %77 : vector<1x16x256xf32> to vector<16x256xf32>
    %79 = vector.shape_cast %78 : vector<16x256xf32> to vector<1x16x256xf32>
    %80 = arith.mulf %76, %79 : vector<1x16x256xf32>
    %81 = arith.addf %74, %80 : vector<1x16x256xf32>
    %c241_i32 = arith.constant 241 : i32
    %82 = tpu.dynamic_rotate %41 by %c241_i32 dim 1 : vector<16x256xf32>, i32 -> vector<16x256xf32>
    %83 = vector.shape_cast %82 : vector<16x256xf32> to vector<1x16x256xf32>
    %c6 = arith.constant 6 : index
    %c0_30 = arith.constant 0 : index
    %c0_31 = arith.constant 0 : index
    %84 = vector.load %arg4[%c6, %c0_30, %c0_31] : memref<9x16x256xf32, #tpu.memory_space<vmem>>, vector<1x16x256xf32>
    %85 = vector.shape_cast %84 : vector<1x16x256xf32> to vector<16x256xf32>
    %86 = vector.shape_cast %85 : vector<16x256xf32> to vector<1x16x256xf32>
    %87 = arith.mulf %83, %86 : vector<1x16x256xf32>
    %88 = arith.addf %81, %87 : vector<1x16x256xf32>
    %c240_i32 = arith.constant 240 : i32
    %89 = tpu.dynamic_rotate %41 by %c240_i32 dim 1 : vector<16x256xf32>, i32 -> vector<16x256xf32>
    %90 = vector.shape_cast %89 : vector<16x256xf32> to vector<1x16x256xf32>
    %c7 = arith.constant 7 : index
    %c0_32 = arith.constant 0 : index
    %c0_33 = arith.constant 0 : index
    %91 = vector.load %arg4[%c7, %c0_32, %c0_33] : memref<9x16x256xf32, #tpu.memory_space<vmem>>, vector<1x16x256xf32>
    %92 = vector.shape_cast %91 : vector<1x16x256xf32> to vector<16x256xf32>
    %93 = vector.shape_cast %92 : vector<16x256xf32> to vector<1x16x256xf32>
    %94 = arith.mulf %90, %93 : vector<1x16x256xf32>
    %95 = arith.addf %88, %94 : vector<1x16x256xf32>
    %c239_i32 = arith.constant 239 : i32
    %96 = tpu.dynamic_rotate %41 by %c239_i32 dim 1 : vector<16x256xf32>, i32 -> vector<16x256xf32>
    %97 = vector.shape_cast %96 : vector<16x256xf32> to vector<1x16x256xf32>
    %c8 = arith.constant 8 : index
    %c0_34 = arith.constant 0 : index
    %c0_35 = arith.constant 0 : index
    %98 = vector.load %arg4[%c8, %c0_34, %c0_35] : memref<9x16x256xf32, #tpu.memory_space<vmem>>, vector<1x16x256xf32>
    %99 = vector.shape_cast %98 : vector<1x16x256xf32> to vector<16x256xf32>
    %100 = vector.shape_cast %99 : vector<16x256xf32> to vector<1x16x256xf32>
    %101 = arith.mulf %97, %100 : vector<1x16x256xf32>
    %102 = arith.addf %95, %101 : vector<1x16x256xf32>
    %c0_36 = arith.constant 0 : index
    %c0_37 = arith.constant 0 : index
    %c0_38 = arith.constant 0 : index
    %103 = vector.load %arg5[%c0_36, %c0_37, %c0_38] : memref<1x16x1xf32, #tpu.memory_space<vmem>>, vector<1x16x1xf32>
    %104 = vector.broadcast %103 : vector<1x16x1xf32> to vector<1x16x256xf32>
    %105 = arith.addf %102, %104 : vector<1x16x256xf32>
    %106 = arith.negf %105 : vector<1x16x256xf32>
    %107 = math.exp %106 : vector<1x16x256xf32>
    %cst_39 = arith.constant 1.000000e+00 : f32
    %108 = vector.broadcast %cst_39 : f32 to vector<1x16x256xf32>
    %109 = arith.addf %108, %107 : vector<1x16x256xf32>
    %110 = arith.divf %108, %109 : vector<1x16x256xf32>
    %111 = arith.mulf %105, %110 : vector<1x16x256xf32>
    %cst_40 = arith.constant dense<0.000000e+00> : vector<1x16xf32>
    %112 = vector.multi_reduction <add>, %111, %cst_40 [2] : vector<1x16x256xf32> to vector<1x16xf32>
    %113 = vector.shape_cast %112 : vector<1x16xf32> to vector<1x16x1xf32>
    %cst_41 = arith.constant 2.560000e+02 : f32
    %114 = vector.broadcast %cst_41 : f32 to vector<1x16x1xf32>
    %115 = arith.divf %113, %114 : vector<1x16x1xf32>
    %c0_42 = arith.constant 0 : index
    %c0_43 = arith.constant 0 : index
    %c0_44 = arith.constant 0 : index
    %116 = vector.load %arg6[%c0_42, %c0_43, %c0_44] : memref<1x16x1xf32, #tpu.memory_space<vmem>>, vector<1x16x1xf32>
    %117 = vector.shape_cast %116 : vector<1x16x1xf32> to vector<16x1xf32>
    %118 = vector.shape_cast %117 : vector<16x1xf32> to vector<1x16x1xf32>
    %119 = arith.mulf %115, %118 : vector<1x16x1xf32>
    %cst_45 = arith.constant dense<0.000000e+00> : vector<1x1xf32>
    %120 = vector.multi_reduction <add>, %119, %cst_45 [1] : vector<1x16x1xf32> to vector<1x1xf32>
    %121 = vector.shape_cast %120 : vector<1x1xf32> to vector<1x1x1xf32>
    %c0_46 = arith.constant 0 : index
    %c0_47 = arith.constant 0 : index
    %c0_48 = arith.constant 0 : index
    %122 = vector.load %arg7[%c0_46, %c0_47, %c0_48] : memref<1x1x1xf32, #tpu.memory_space<vmem>>, vector<1x1x1xf32>
    %123 = vector.shape_cast %122 : vector<1x1x1xf32> to vector<1x1xf32>
    %124 = vector.shape_cast %123 : vector<1x1xf32> to vector<1x1x1xf32>
    %125 = arith.addf %121, %124 : vector<1x1x1xf32>
    %126 = arith.negf %125 : vector<1x1x1xf32>
    %127 = math.exp %126 : vector<1x1x1xf32>
    %cst_49 = arith.constant 1.000000e+00 : f32
    %128 = vector.broadcast %cst_49 : f32 to vector<1x1x1xf32>
    %129 = arith.addf %128, %127 : vector<1x1x1xf32>
    %130 = arith.divf %128, %129 : vector<1x1x1xf32>
    %131 = arith.mulf %125, %130 : vector<1x1x1xf32>
    %c0_50 = arith.constant 0 : index
    %c0_51 = arith.constant 0 : index
    %c0_52 = arith.constant 0 : index
    %132 = vector.load %arg8[%c0_50, %c0_51, %c0_52] : memref<1x16x1xf32, #tpu.memory_space<vmem>>, vector<1x16x1xf32>
    %133 = vector.shape_cast %132 : vector<1x16x1xf32> to vector<16x1xf32>
    %134 = vector.shape_cast %133 : vector<16x1xf32> to vector<1x16x1xf32>
    %135 = vector.broadcast %131 : vector<1x1x1xf32> to vector<1x16x1xf32>
    %136 = arith.mulf %135, %134 : vector<1x16x1xf32>
    %c0_53 = arith.constant 0 : index
    %c0_54 = arith.constant 0 : index
    %c0_55 = arith.constant 0 : index
    %137 = vector.load %arg9[%c0_53, %c0_54, %c0_55] : memref<1x16x1xf32, #tpu.memory_space<vmem>>, vector<1x16x1xf32>
    %138 = arith.addf %136, %137 : vector<1x16x1xf32>
    %139 = arith.negf %138 : vector<1x16x1xf32>
    %140 = math.exp %139 : vector<1x16x1xf32>
    %cst_56 = arith.constant 1.000000e+00 : f32
    %141 = vector.broadcast %cst_56 : f32 to vector<1x16x1xf32>
    %142 = arith.addf %141, %140 : vector<1x16x1xf32>
    %143 = arith.divf %141, %142 : vector<1x16x1xf32>
    %144 = vector.broadcast %143 : vector<1x16x1xf32> to vector<1x16x256xf32>
    %145 = arith.mulf %111, %144 : vector<1x16x256xf32>
    %146 = vector.extract_strided_slice %145 {offsets = [0, 0, 0], sizes = [1, 1, 256], strides = [1, 1, 1]} : vector<1x16x256xf32> to vector<1x1x256xf32>
    %c0_57 = arith.constant 0 : index
    %c0_58 = arith.constant 0 : index
    %c0_59 = arith.constant 0 : index
    %147 = vector.load %arg10[%c0_57, %c0_58, %c0_59] : memref<16x4x1xf32, #tpu.memory_space<vmem>>, vector<1x4x1xf32>
    %148 = vector.shape_cast %147 : vector<1x4x1xf32> to vector<4x1xf32>
    %149 = vector.shape_cast %148 : vector<4x1xf32> to vector<1x4x1xf32>
    %150 = vector.broadcast %146 : vector<1x1x256xf32> to vector<1x4x256xf32>
    %151 = vector.broadcast %149 : vector<1x4x1xf32> to vector<1x4x256xf32>
    %152 = arith.mulf %150, %151 : vector<1x4x256xf32>
    %153 = vector.extract_strided_slice %145 {offsets = [0, 1, 0], sizes = [1, 1, 256], strides = [1, 1, 1]} : vector<1x16x256xf32> to vector<1x1x256xf32>
    %c1_60 = arith.constant 1 : index
    %c0_61 = arith.constant 0 : index
    %c0_62 = arith.constant 0 : index
    %154 = vector.load %arg10[%c1_60, %c0_61, %c0_62] : memref<16x4x1xf32, #tpu.memory_space<vmem>>, vector<1x4x1xf32>
    %155 = vector.shape_cast %154 : vector<1x4x1xf32> to vector<4x1xf32>
    %156 = vector.shape_cast %155 : vector<4x1xf32> to vector<1x4x1xf32>
    %157 = vector.broadcast %153 : vector<1x1x256xf32> to vector<1x4x256xf32>
    %158 = vector.broadcast %156 : vector<1x4x1xf32> to vector<1x4x256xf32>
    %159 = arith.mulf %157, %158 : vector<1x4x256xf32>
    %160 = arith.addf %152, %159 : vector<1x4x256xf32>
    %161 = vector.extract_strided_slice %145 {offsets = [0, 2, 0], sizes = [1, 1, 256], strides = [1, 1, 1]} : vector<1x16x256xf32> to vector<1x1x256xf32>
    %c2_63 = arith.constant 2 : index
    %c0_64 = arith.constant 0 : index
    %c0_65 = arith.constant 0 : index
    %162 = vector.load %arg10[%c2_63, %c0_64, %c0_65] : memref<16x4x1xf32, #tpu.memory_space<vmem>>, vector<1x4x1xf32>
    %163 = vector.shape_cast %162 : vector<1x4x1xf32> to vector<4x1xf32>
    %164 = vector.shape_cast %163 : vector<4x1xf32> to vector<1x4x1xf32>
    %165 = vector.broadcast %161 : vector<1x1x256xf32> to vector<1x4x256xf32>
    %166 = vector.broadcast %164 : vector<1x4x1xf32> to vector<1x4x256xf32>
    %167 = arith.mulf %165, %166 : vector<1x4x256xf32>
    %168 = arith.addf %160, %167 : vector<1x4x256xf32>
    %169 = vector.extract_strided_slice %145 {offsets = [0, 3, 0], sizes = [1, 1, 256], strides = [1, 1, 1]} : vector<1x16x256xf32> to vector<1x1x256xf32>
    %c3_66 = arith.constant 3 : index
    %c0_67 = arith.constant 0 : index
    %c0_68 = arith.constant 0 : index
    %170 = vector.load %arg10[%c3_66, %c0_67, %c0_68] : memref<16x4x1xf32, #tpu.memory_space<vmem>>, vector<1x4x1xf32>
    %171 = vector.shape_cast %170 : vector<1x4x1xf32> to vector<4x1xf32>
    %172 = vector.shape_cast %171 : vector<4x1xf32> to vector<1x4x1xf32>
    %173 = vector.broadcast %169 : vector<1x1x256xf32> to vector<1x4x256xf32>
    %174 = vector.broadcast %172 : vector<1x4x1xf32> to vector<1x4x256xf32>
    %175 = arith.mulf %173, %174 : vector<1x4x256xf32>
    %176 = arith.addf %168, %175 : vector<1x4x256xf32>
    %177 = vector.extract_strided_slice %145 {offsets = [0, 4, 0], sizes = [1, 1, 256], strides = [1, 1, 1]} : vector<1x16x256xf32> to vector<1x1x256xf32>
    %c4_69 = arith.constant 4 : index
    %c0_70 = arith.constant 0 : index
    %c0_71 = arith.constant 0 : index
    %178 = vector.load %arg10[%c4_69, %c0_70, %c0_71] : memref<16x4x1xf32, #tpu.memory_space<vmem>>, vector<1x4x1xf32>
    %179 = vector.shape_cast %178 : vector<1x4x1xf32> to vector<4x1xf32>
    %180 = vector.shape_cast %179 : vector<4x1xf32> to vector<1x4x1xf32>
    %181 = vector.broadcast %177 : vector<1x1x256xf32> to vector<1x4x256xf32>
    %182 = vector.broadcast %180 : vector<1x4x1xf32> to vector<1x4x256xf32>
    %183 = arith.mulf %181, %182 : vector<1x4x256xf32>
    %184 = arith.addf %176, %183 : vector<1x4x256xf32>
    %185 = vector.extract_strided_slice %145 {offsets = [0, 5, 0], sizes = [1, 1, 256], strides = [1, 1, 1]} : vector<1x16x256xf32> to vector<1x1x256xf32>
    %c5_72 = arith.constant 5 : index
    %c0_73 = arith.constant 0 : index
    %c0_74 = arith.constant 0 : index
    %186 = vector.load %arg10[%c5_72, %c0_73, %c0_74] : memref<16x4x1xf32, #tpu.memory_space<vmem>>, vector<1x4x1xf32>
    %187 = vector.shape_cast %186 : vector<1x4x1xf32> to vector<4x1xf32>
    %188 = vector.shape_cast %187 : vector<4x1xf32> to vector<1x4x1xf32>
    %189 = vector.broadcast %185 : vector<1x1x256xf32> to vector<1x4x256xf32>
    %190 = vector.broadcast %188 : vector<1x4x1xf32> to vector<1x4x256xf32>
    %191 = arith.mulf %189, %190 : vector<1x4x256xf32>
    %192 = arith.addf %184, %191 : vector<1x4x256xf32>
    %193 = vector.extract_strided_slice %145 {offsets = [0, 6, 0], sizes = [1, 1, 256], strides = [1, 1, 1]} : vector<1x16x256xf32> to vector<1x1x256xf32>
    %c6_75 = arith.constant 6 : index
    %c0_76 = arith.constant 0 : index
    %c0_77 = arith.constant 0 : index
    %194 = vector.load %arg10[%c6_75, %c0_76, %c0_77] : memref<16x4x1xf32, #tpu.memory_space<vmem>>, vector<1x4x1xf32>
    %195 = vector.shape_cast %194 : vector<1x4x1xf32> to vector<4x1xf32>
    %196 = vector.shape_cast %195 : vector<4x1xf32> to vector<1x4x1xf32>
    %197 = vector.broadcast %193 : vector<1x1x256xf32> to vector<1x4x256xf32>
    %198 = vector.broadcast %196 : vector<1x4x1xf32> to vector<1x4x256xf32>
    %199 = arith.mulf %197, %198 : vector<1x4x256xf32>
    %200 = arith.addf %192, %199 : vector<1x4x256xf32>
    %201 = vector.extract_strided_slice %145 {offsets = [0, 7, 0], sizes = [1, 1, 256], strides = [1, 1, 1]} : vector<1x16x256xf32> to vector<1x1x256xf32>
    %c7_78 = arith.constant 7 : index
    %c0_79 = arith.constant 0 : index
    %c0_80 = arith.constant 0 : index
    %202 = vector.load %arg10[%c7_78, %c0_79, %c0_80] : memref<16x4x1xf32, #tpu.memory_space<vmem>>, vector<1x4x1xf32>
    %203 = vector.shape_cast %202 : vector<1x4x1xf32> to vector<4x1xf32>
    %204 = vector.shape_cast %203 : vector<4x1xf32> to vector<1x4x1xf32>
    %205 = vector.broadcast %201 : vector<1x1x256xf32> to vector<1x4x256xf32>
    %206 = vector.broadcast %204 : vector<1x4x1xf32> to vector<1x4x256xf32>
    %207 = arith.mulf %205, %206 : vector<1x4x256xf32>
    %208 = arith.addf %200, %207 : vector<1x4x256xf32>
    %209 = vector.extract_strided_slice %145 {offsets = [0, 8, 0], sizes = [1, 1, 256], strides = [1, 1, 1]} : vector<1x16x256xf32> to vector<1x1x256xf32>
    %c8_81 = arith.constant 8 : index
    %c0_82 = arith.constant 0 : index
    %c0_83 = arith.constant 0 : index
    %210 = vector.load %arg10[%c8_81, %c0_82, %c0_83] : memref<16x4x1xf32, #tpu.memory_space<vmem>>, vector<1x4x1xf32>
    %211 = vector.shape_cast %210 : vector<1x4x1xf32> to vector<4x1xf32>
    %212 = vector.shape_cast %211 : vector<4x1xf32> to vector<1x4x1xf32>
    %213 = vector.broadcast %209 : vector<1x1x256xf32> to vector<1x4x256xf32>
    %214 = vector.broadcast %212 : vector<1x4x1xf32> to vector<1x4x256xf32>
    %215 = arith.mulf %213, %214 : vector<1x4x256xf32>
    %216 = arith.addf %208, %215 : vector<1x4x256xf32>
    %217 = vector.extract_strided_slice %145 {offsets = [0, 9, 0], sizes = [1, 1, 256], strides = [1, 1, 1]} : vector<1x16x256xf32> to vector<1x1x256xf32>
    %c9 = arith.constant 9 : index
    %c0_84 = arith.constant 0 : index
    %c0_85 = arith.constant 0 : index
    %218 = vector.load %arg10[%c9, %c0_84, %c0_85] : memref<16x4x1xf32, #tpu.memory_space<vmem>>, vector<1x4x1xf32>
    %219 = vector.shape_cast %218 : vector<1x4x1xf32> to vector<4x1xf32>
    %220 = vector.shape_cast %219 : vector<4x1xf32> to vector<1x4x1xf32>
    %221 = vector.broadcast %217 : vector<1x1x256xf32> to vector<1x4x256xf32>
    %222 = vector.broadcast %220 : vector<1x4x1xf32> to vector<1x4x256xf32>
    %223 = arith.mulf %221, %222 : vector<1x4x256xf32>
    %224 = arith.addf %216, %223 : vector<1x4x256xf32>
    %225 = vector.extract_strided_slice %145 {offsets = [0, 10, 0], sizes = [1, 1, 256], strides = [1, 1, 1]} : vector<1x16x256xf32> to vector<1x1x256xf32>
    %c10 = arith.constant 10 : index
    %c0_86 = arith.constant 0 : index
    %c0_87 = arith.constant 0 : index
    %226 = vector.load %arg10[%c10, %c0_86, %c0_87] : memref<16x4x1xf32, #tpu.memory_space<vmem>>, vector<1x4x1xf32>
    %227 = vector.shape_cast %226 : vector<1x4x1xf32> to vector<4x1xf32>
    %228 = vector.shape_cast %227 : vector<4x1xf32> to vector<1x4x1xf32>
    %229 = vector.broadcast %225 : vector<1x1x256xf32> to vector<1x4x256xf32>
    %230 = vector.broadcast %228 : vector<1x4x1xf32> to vector<1x4x256xf32>
    %231 = arith.mulf %229, %230 : vector<1x4x256xf32>
    %232 = arith.addf %224, %231 : vector<1x4x256xf32>
    %233 = vector.extract_strided_slice %145 {offsets = [0, 11, 0], sizes = [1, 1, 256], strides = [1, 1, 1]} : vector<1x16x256xf32> to vector<1x1x256xf32>
    %c11 = arith.constant 11 : index
    %c0_88 = arith.constant 0 : index
    %c0_89 = arith.constant 0 : index
    %234 = vector.load %arg10[%c11, %c0_88, %c0_89] : memref<16x4x1xf32, #tpu.memory_space<vmem>>, vector<1x4x1xf32>
    %235 = vector.shape_cast %234 : vector<1x4x1xf32> to vector<4x1xf32>
    %236 = vector.shape_cast %235 : vector<4x1xf32> to vector<1x4x1xf32>
    %237 = vector.broadcast %233 : vector<1x1x256xf32> to vector<1x4x256xf32>
    %238 = vector.broadcast %236 : vector<1x4x1xf32> to vector<1x4x256xf32>
    %239 = arith.mulf %237, %238 : vector<1x4x256xf32>
    %240 = arith.addf %232, %239 : vector<1x4x256xf32>
    %241 = vector.extract_strided_slice %145 {offsets = [0, 12, 0], sizes = [1, 1, 256], strides = [1, 1, 1]} : vector<1x16x256xf32> to vector<1x1x256xf32>
    %c12 = arith.constant 12 : index
    %c0_90 = arith.constant 0 : index
    %c0_91 = arith.constant 0 : index
    %242 = vector.load %arg10[%c12, %c0_90, %c0_91] : memref<16x4x1xf32, #tpu.memory_space<vmem>>, vector<1x4x1xf32>
    %243 = vector.shape_cast %242 : vector<1x4x1xf32> to vector<4x1xf32>
    %244 = vector.shape_cast %243 : vector<4x1xf32> to vector<1x4x1xf32>
    %245 = vector.broadcast %241 : vector<1x1x256xf32> to vector<1x4x256xf32>
    %246 = vector.broadcast %244 : vector<1x4x1xf32> to vector<1x4x256xf32>
    %247 = arith.mulf %245, %246 : vector<1x4x256xf32>
    %248 = arith.addf %240, %247 : vector<1x4x256xf32>
    %249 = vector.extract_strided_slice %145 {offsets = [0, 13, 0], sizes = [1, 1, 256], strides = [1, 1, 1]} : vector<1x16x256xf32> to vector<1x1x256xf32>
    %c13 = arith.constant 13 : index
    %c0_92 = arith.constant 0 : index
    %c0_93 = arith.constant 0 : index
    %250 = vector.load %arg10[%c13, %c0_92, %c0_93] : memref<16x4x1xf32, #tpu.memory_space<vmem>>, vector<1x4x1xf32>
    %251 = vector.shape_cast %250 : vector<1x4x1xf32> to vector<4x1xf32>
    %252 = vector.shape_cast %251 : vector<4x1xf32> to vector<1x4x1xf32>
    %253 = vector.broadcast %249 : vector<1x1x256xf32> to vector<1x4x256xf32>
    %254 = vector.broadcast %252 : vector<1x4x1xf32> to vector<1x4x256xf32>
    %255 = arith.mulf %253, %254 : vector<1x4x256xf32>
    %256 = arith.addf %248, %255 : vector<1x4x256xf32>
    %257 = vector.extract_strided_slice %145 {offsets = [0, 14, 0], sizes = [1, 1, 256], strides = [1, 1, 1]} : vector<1x16x256xf32> to vector<1x1x256xf32>
    %c14 = arith.constant 14 : index
    %c0_94 = arith.constant 0 : index
    %c0_95 = arith.constant 0 : index
    %258 = vector.load %arg10[%c14, %c0_94, %c0_95] : memref<16x4x1xf32, #tpu.memory_space<vmem>>, vector<1x4x1xf32>
    %259 = vector.shape_cast %258 : vector<1x4x1xf32> to vector<4x1xf32>
    %260 = vector.shape_cast %259 : vector<4x1xf32> to vector<1x4x1xf32>
    %261 = vector.broadcast %257 : vector<1x1x256xf32> to vector<1x4x256xf32>
    %262 = vector.broadcast %260 : vector<1x4x1xf32> to vector<1x4x256xf32>
    %263 = arith.mulf %261, %262 : vector<1x4x256xf32>
    %264 = arith.addf %256, %263 : vector<1x4x256xf32>
    %265 = vector.extract_strided_slice %145 {offsets = [0, 15, 0], sizes = [1, 1, 256], strides = [1, 1, 1]} : vector<1x16x256xf32> to vector<1x1x256xf32>
    %c15 = arith.constant 15 : index
    %c0_96 = arith.constant 0 : index
    %c0_97 = arith.constant 0 : index
    %266 = vector.load %arg10[%c15, %c0_96, %c0_97] : memref<16x4x1xf32, #tpu.memory_space<vmem>>, vector<1x4x1xf32>
    %267 = vector.shape_cast %266 : vector<1x4x1xf32> to vector<4x1xf32>
    %268 = vector.shape_cast %267 : vector<4x1xf32> to vector<1x4x1xf32>
    %269 = vector.broadcast %265 : vector<1x1x256xf32> to vector<1x4x256xf32>
    %270 = vector.broadcast %268 : vector<1x4x1xf32> to vector<1x4x256xf32>
    %271 = arith.mulf %269, %270 : vector<1x4x256xf32>
    %272 = arith.addf %264, %271 : vector<1x4x256xf32>
    %c0_98 = arith.constant 0 : index
    %c0_99 = arith.constant 0 : index
    %c0_100 = arith.constant 0 : index
    %273 = vector.load %arg11[%c0_98, %c0_99, %c0_100] : memref<1x4x1xf32, #tpu.memory_space<vmem>>, vector<1x4x1xf32>
    %274 = vector.broadcast %273 : vector<1x4x1xf32> to vector<1x4x256xf32>
    %275 = arith.addf %272, %274 : vector<1x4x256xf32>
    %276 = arith.addf %275, %0 : vector<1x4x256xf32>
    %c0_101 = arith.constant 0 : index
    %c0_102 = arith.constant 0 : index
    %c0_103 = arith.constant 0 : index
    %277 = vector.load %arg12[%c0_101, %c0_102, %c0_103] : memref<1x4x256xf32, #tpu.memory_space<vmem>>, vector<1x4x256xf32>
    tpu.vector_store %arg12[%c0_101, %c0_102, %c0_103], %276 {strides = array<i32>} : memref<1x4x256xf32, #tpu.memory_space<vmem>>, vector<1x4x256xf32>,
    return
  }
  func.func @transform_0(%arg0: i32) -> (i32, i32, i32) {
    %c0_i32 = arith.constant 0 : i32
    %c0_i32_0 = arith.constant 0 : i32
    %c0_i32_1 = arith.constant 0 : i32
    return %arg0, %c0_i32, %c0_i32_0 : i32, i32, i32
  }
  func.func @transform_1(%arg0: i32) -> (i32, i32, i32) {
    %c0_i32 = arith.constant 0 : i32
    %c0_i32_0 = arith.constant 0 : i32
    %c0_i32_1 = arith.constant 0 : i32
    %c0_i32_2 = arith.constant 0 : i32
    return %c0_i32, %c0_i32_0, %c0_i32_1 : i32, i32, i32
  }
  func.func @transform_2(%arg0: i32) -> (i32, i32, i32) {
    %c0_i32 = arith.constant 0 : i32
    %c0_i32_0 = arith.constant 0 : i32
    %c0_i32_1 = arith.constant 0 : i32
    %c0_i32_2 = arith.constant 0 : i32
    return %c0_i32, %c0_i32_0, %c0_i32_1 : i32, i32, i32
  }
  func.func @transform_3(%arg0: i32) -> (i32, i32, i32) {
    %c0_i32 = arith.constant 0 : i32
    %c0_i32_0 = arith.constant 0 : i32
    %c0_i32_1 = arith.constant 0 : i32
    %c0_i32_2 = arith.constant 0 : i32
    return %c0_i32, %c0_i32_0, %c0_i32_1 : i32, i32, i32
  }
  func.func @transform_4(%arg0: i32) -> (i32, i32, i32) {
    %c0_i32 = arith.constant 0 : i32
    %c0_i32_0 = arith.constant 0 : i32
    %c0_i32_1 = arith.constant 0 : i32
    %c0_i32_2 = arith.constant 0 : i32
    return %c0_i32, %c0_i32_0, %c0_i32_1 : i32, i32, i32
  }
  func.func @transform_5(%arg0: i32) -> (i32, i32, i32) {
    %c0_i32 = arith.constant 0 : i32
    %c0_i32_0 = arith.constant 0 : i32
    %c0_i32_1 = arith.constant 0 : i32
    %c0_i32_2 = arith.constant 0 : i32
    return %c0_i32, %c0_i32_0, %c0_i32_1 : i32, i32, i32
  }
  func.func @transform_6(%arg0: i32) -> (i32, i32, i32) {
    %c0_i32 = arith.constant 0 : i32
    %c0_i32_0 = arith.constant 0 : i32
    %c0_i32_1 = arith.constant 0 : i32
    %c0_i32_2 = arith.constant 0 : i32
    return %c0_i32, %c0_i32_0, %c0_i32_1 : i32, i32, i32
  }
  func.func @transform_7(%arg0: i32) -> (i32, i32, i32) {
    %c0_i32 = arith.constant 0 : i32
    %c0_i32_0 = arith.constant 0 : i32
    %c0_i32_1 = arith.constant 0 : i32
    %c0_i32_2 = arith.constant 0 : i32
    return %c0_i32, %c0_i32_0, %c0_i32_1 : i32, i32, i32
  }
  func.func @transform_8(%arg0: i32) -> (i32, i32, i32) {
    %c0_i32 = arith.constant 0 : i32
    %c0_i32_0 = arith.constant 0 : i32
    %c0_i32_1 = arith.constant 0 : i32
    %c0_i32_2 = arith.constant 0 : i32
    return %c0_i32, %c0_i32_0, %c0_i32_1 : i32, i32, i32
  }
  func.func @transform_9(%arg0: i32) -> (i32, i32, i32) {
    %c0_i32 = arith.constant 0 : i32
    %c0_i32_0 = arith.constant 0 : i32
    %c0_i32_1 = arith.constant 0 : i32
    %c0_i32_2 = arith.constant 0 : i32
    return %c0_i32, %c0_i32_0, %c0_i32_1 : i32, i32, i32
  }
  func.func @transform_10(%arg0: i32) -> (i32, i32, i32) {
    %c0_i32 = arith.constant 0 : i32
    %c0_i32_0 = arith.constant 0 : i32
    %c0_i32_1 = arith.constant 0 : i32
    %c0_i32_2 = arith.constant 0 : i32
    return %c0_i32, %c0_i32_0, %c0_i32_1 : i32, i32, i32
  }
  func.func @transform_11(%arg0: i32) -> (i32, i32, i32) {
    %c0_i32 = arith.constant 0 : i32
    %c0_i32_0 = arith.constant 0 : i32
    %c0_i32_1 = arith.constant 0 : i32
    return %arg0, %c0_i32, %c0_i32_0 : i32, i32, i32
  }
}

</mosaic_0001>

<bundles_post_ra>
// kernel: tpu_custom_call.1
= control target key start
LH: loop header
LB: loop body
LE: loop exit
PB: predicated region body
PF: predicated region fallthrough
CT: control target
= control target key end

     0   :  { %s2165_s0 = inlined_call_operand.vmem [shape: f32[2,4,256], index: 0, kind: input, shape index: {}]   ;;  %s2166_s1 = inlined_call_operand.vmem [shape: f32[4,16,1], index: 1, kind: input, shape index: {}]   ;;  %s2167_s2 = inlined_call_operand.vmem [shape: f32[1,16,1], index: 2, kind: input, shape index: {}]   ;;  %s2168_s3 = inlined_call_operand.hbm [shape: f32[9,16,256], index: 3, kind: input, shape index: {}]   ;;  %s2169_s4 = inlined_call_operand.vmem [shape: f32[1,16,1], index: 4, kind: input, shape index: {}]   ;;  %s2170_s5 = inlined_call_operand.vmem [shape: f32[1,16,1], index: 5, kind: input, shape index: {}]   ;;  %s2171_s6 = inlined_call_operand.<no memory space> [shape: f32[1,1,1], index: 6, kind: input, shape index: {}]   ;;  %s2172_s7 = inlined_call_operand.vmem [shape: f32[1,16,1], index: 7, kind: input, shape index: {}]   ;;  %s2173_s8 = inlined_call_operand.vmem [shape: f32[1,16,1], index: 8, kind: input, shape index: {}]   ;;  %s2174_s9 = inlined_call_operand.vmem [shape: f32[16,4,1], index: 9, kind: input, shape index: {}]   ;;  %s2175_s10 = inlined_call_operand.vmem [shape: f32[1,4,1], index: 10, kind: input, shape index: {}]   ;;  %s2176_s11 = inlined_call_operand.hbm [shape: f32[2,4,256], index: 11, kind: output, shape index: {}]  }
   0x1   :  { %v16_v0 = vstv %s2171_s6 }
   0x2   :  { %17 = vst [vmem:[#allocation2] sm:$0x1] %v16_v0 }
   0x3   :  { %18 = vsyncpa [#allocation4], 0 }
   0x4   :  { %19 = vsyncpa [#allocation5], 0 }
   0x5   :  { %21 = vsyncpa [#allocation5 + $0x1], 0  ;;  %s1664_s19 = smov 0   ;;  %s1666_s20 = smov 0  }
   0x6   :  { %s1668_s21 = smov 0   ;;  %s1670_s22 = smov 0  }
   0x7 LB: > { %s1685_s6 = sadd.s32 4294967295, %s1586_s22   ;;  %s1335_s23 = sadd.s32 4294967294, %s1586_s22   ;;  %s1586_s22 = sphi %s1670_s22, %s2192_s22   ;;  %s1582_s21 = sphi %s1668_s21, %s2191_s21   ;;  %s1578_s20 = sphi %s1666_s20, %s2190_s20   ;;  %s1574_s19 = sphi %s1664_s19, %s2189_s19  }
   0x8   : > { %s1689_s24 = sadd.s32 1, %s1586_s22   ;;  %s270_s25 = sadd.s32 1, %s1582_s21 }
   0x9   : > { %s267_s26 = ssub.s32 %s1586_s22, %s1689_s24  ;;  %p280_p0 = scmp.ne.s32.totalorder %s1582_s21, %s1578_s20 }
   0xa   : > { %p268_p1 = scmp.eq.s32.totalorder %s267_s26, 0  ;;  %p281_p2 = scmp.eq.s32.totalorder %s1685_s6, 1 }
   0xb   : > { %p286_p3 = scmp.ne.s32.totalorder %s1578_s20, %s1574_s19  ;;  %p287_p4 = scmp.eq.s32.totalorder %s1335_s23, 1 }
   0xc   : > { %s1700_s27 = scalar_select %p268_p1, %s1582_s21, %s270_s25  }
   0xd   : > { %p1702_p5 = por %p281_p2, %p280_p0  ;;  %p1706_p6 = por %p287_p4, %p286_p3 }
   0xe   : > { %p1336_p7 = scmp.ge.s32.totalorder %s1586_s22, 1  ;;  %p294_p8 = scmp.lt.s32.totalorder %s1586_s22, 3 }
   0xf   : > { %s2180_s28 = scalar_select %p1702_p5, 1, 0 }
  0x10   : > { %s2181_s29 = scalar_select %p1706_p6, 1, 0 }
  0x11   : > { %p2177_p9 = scmp.eq.s32.totalorder %s1685_s6, 0  ;;  %p1713_p10 = pnand %p1336_p7, %p294_p8 }
  0x12   : > { %s1588_s12 = smov [#allocation3]   ;;  %s1492_s17 = scalar_lea.hbm %s2168_s3, 4608 }
  0x13   : > { %s2182_s30 = scalar_select %p1713_p10, 1, 0 }
  0x14   : > { %s312_s13 = sshll.u32 %s1588_s12, 4  ;;  %p1389_p11 = pneg %p1713_p10  ;;  %s313_s13 = int_to_ptr.vmem [resolvable:$true] %s312_s13 }
  0x15   : > { %p1493_p13 = scmp.ne.s32.totalorder %s2168_s3, %s1492_s17  ;;  %p1499_p3 = scmp.lt.u32.totalorder %s1492_s17, %s2168_s3 }
  0x16   : > { %p1721_p12 = pnand %p2177_p9, %p1389_p11 }
  0x18   : > { %p1494_p0 = pneg %p1721_p12 }
  0x1a   : > { %p1495_p1 = pnand %p1494_p0, %p1493_p13 }
  0x1c   : > { %p1496_p2 = pneg %p1495_p1 }
  0x1e   : > { %p1501_p4 = pnand %p1499_p3, %p1496_p2 }
  0x20   : > { %1504 = shalt.err (!%p1501_p4)
}
  0x21   : > { %s1505_s12 = scalar_lea.vmem %s313_s13, 4608  ;;  %p1513_p9 = scmp.lt.s32.totalorder %s313_s13, %s313_s13 }
  0x22   : > { %p1506_p7 = scmp.ne.s32.totalorder %s313_s13, %s1505_s12  ;;  %p1514_p6 = scmp.lt.s32.totalorder %s1505_s12, %s1505_s12 }
  0x24   : > { %p1508_p8 = pnand %p1506_p7, %p1494_p0  ;;  %p1515_p5 = por %p1514_p6, %p1513_p9 }
  0x26   : > { %p1509_p11 = pneg %p1508_p8 }
  0x28   : > { %p1516_p10 = pnand %p1515_p5, %p1509_p11 }
  0x2a   : > { %1519 = shalt.err (!%p1516_p10)
}
  0x2b   : > { %s1589_s15 = smov 256   ;;  %s1590_s16 = smov 16  }
  0x2c   : > { %1392 = dma.hbm_to_vmem [thread:$0]  (!%p1721_p12), %s2168_s3, 4608, %s313_s13, [#allocation4], %s1589_s15, %s1589_s15, %s1590_s16  }
  0x2d   : > { %p2184_p13 = scmp.ne.s32.totalorder %s2182_s30, 0 }
  0x2e   : > { %p2185_p1 = scmp.eq.s32.totalorder (!%p2184_p13), %s1685_s6, 0 }
  0x2f   : > { %357 = sbr.rel (%p2184_p13) target bundleno = 855 (0x357), region = 64 }
  0x36   : > { %1565 = dma.done.wait (%p2185_p1), [#allocation4], 4608   ;;  %p2186_p0 = pmov %p2185_p1 }
  0x37   : > { %v1591_v1 = vmov 0   ;;  %v1344_v2 = vld [vmem:[%s2166_s1 + $0x10] sm:$0xff]  ;;  %v403_v3 = vld [vmem:[%s2166_s1] sm:$0xff]  ;;  %v1345_v4 = vld [vmem:[%s2166_s1 + $0x18] sm:$0xff]  ;;  %p397_p5 = scmp.lt.s32.totalorder %s1685_s6, 1  ;;  %v406_v14 = vlaneseq  ;;  %s1592_s15 = smov 17  }
  0x38   : > { %1567 = vsyncadd (%p2186_p0), [#allocation4], 4294962688  ;;  %1445 = vset.pattern.permute.xlu1 %v1591_v1  ;;  %1444 = vset.pattern.permute.xlu0 %v1591_v1  ;;  %v404_v5 = vld [vmem:[%s2166_s1 + $0x8] sm:$0xff]  ;;  %v1346_v7 = vld [vmem:[%s2166_s1 + $0x20] sm:$0xff]  ;;  %s1593_s16 = smov 16   ;;  %s1594_s18 = smov 15  }
  0x39   : > { %461 = vperm.xlu1 %1445, %v1344_v2   ;;  %426 = vperm.xlu0 %1444, %v403_v3   ;;  %v1347_v6 = vld [vmem:[%s2166_s1 + $0x28] sm:$0xff]  ;;  %v1349_v8 = vld [vmem:[%s2166_s1 + $0x38] sm:$0xff]  ;;  %v1348_v9 = vld [vmem:[%s2166_s1 + $0x30] sm:$0xff]  ;;  %s398_s14 = scalar_select %p397_p5, %s1685_s6, 1  ;;  %v407_v15 = vshrl.u32 %v406_v14, 7  ;;  %vm874_vm8 = vcmask 7168  }
  0x3a   : > { %v556_v10 = vld [vmem:[%s2167_s2 + $0x8] sm:$0xff]  ;;  %v555_v11 = vld [vmem:[%s2167_s2] sm:$0xff]  ;;  %s1595_s23 = smov 1   ;;  %s1596_s17 = smov 127  }
  0x3b   : > { %v818_v12 = vld [vmem:[%s2169_s4 + $0x8] sm:$0xff]  ;;  %v817_v13 = vld [vmem:[%s2169_s4] sm:$0xff]  ;;  %s1381_s26 = sshll.u32 %s398_s14, 3  ;;  %v1791_v16 = vsub.s32 1, %v407_v15  ;;  %v1793_v17 = vsub.s32 5, %v407_v15  ;;  %v1795_v18 = vsub.s32 0, %v407_v15 }
  0x3c   : > { %s1789_s12 = scalar_lea.vmem %s2165_s0, %s1381_s26  ;;  %v1797_v19 = vsub.s32 4, %v407_v15  ;;  %v1800_v21 = vsub.s32 2, %v407_v15  ;;  %v1802_v22 = vsub.s32 6, %v407_v15  ;;  %v1810_v31 = vsub.s32 3, %v407_v15  ;;  %s1597_s25 = smov 113  }
  0x3d   : > { %466 = vperm.xlu1 %1445, %v1345_v4   ;;  %431 = vperm.xlu0 %1444, %v404_v5   ;;  %v402_v20 = vld [vmem:[%s1789_s12] sm:$0xff]  ;;  %v1812_v32 = vsub.s32 7, %v407_v15  ;;  %s1598_s14 = smov 112   ;;  %s1599_s26 = smov 111  }
  0x3e   : > { %v444_v23 = vrot.slane %v402_v20, %v1791_v16  ;;  %v448_v24 = vrot.slane %v402_v20, %v1793_v17  ;;  %v409_v25 = vrot.slane %v402_v20, %v1795_v18  ;;  %v413_v26 = vrot.slane %v402_v20, %v1797_v19  ;;  %p2187_p9 = scmp.ne.s32.totalorder %s2180_s28, 0 }
  0x3f   : > { %v483_v29 = vrot.slane %v402_v20, %v1800_v21  ;;  %v487_v30 = vrot.slane %v402_v20, %v1802_v22  ;;  %v522_v41 = vrot.slane %v402_v20, %v1810_v31  ;;  %v526_v42 = vrot.slane %v402_v20, %v1812_v32 }
  0x40   : > { %v454_v33 = vrot.slane %v444_v23, %v1791_v16  ;;  %v458_v34 = vrot.slane %v448_v24, %v1791_v16  ;;  %v419_v35 = vrot.slane %v409_v25, %v1795_v18  ;;  %v423_v36 = vrot.slane %v413_v26, %v1795_v18 }
  0x41   : > { %505 = vperm.xlu1 %1445, %v1347_v6   ;;  %500 = vperm.xlu0 %1444, %v1346_v7   ;;  %v493_v39 = vrot.slane %v483_v29, %v1800_v21  ;;  %v497_v40 = vrot.slane %v487_v30, %v1800_v21  ;;  %v532_v53 = vrot.slane %v522_v41, %v1810_v31 }
  0x42   : > { %v536_v54 = vrot.slane %v526_v42, %v1810_v31 }
  0x45   : > { %544 = vperm.xlu1 %1445, %v1349_v8   ;;  %539 = vperm.xlu0 %1444, %v1348_v9  }
  0x49   : > { %564 = vperm.xlu1 %1445, %v556_v10   ;;  %559 = vperm.xlu0 %1444, %v555_v11  }
  0x4d   : > { %826 = vperm.xlu1 %1445, %v818_v12   ;;  %821 = vperm.xlu0 %1444, %v817_v13  }
  0xb8   : > { %v462_v27 = vpop.permute.xlu1 %461  ;;  %v427_v28 = vpop.permute.xlu0 %426 }
  0xb9   : > { %v469_v43 = vmul.f32 %v462_v27, %v454_v33  ;;  %v470_v44 = vmul.f32 %v462_v27, %v458_v34  ;;  %v434_v45 = vmul.f32 %v427_v28, %v419_v35  ;;  %v435_v46 = vmul.f32 %v427_v28, %v423_v36 }
  0xbb   : > { %v473_v59 = vadd.f32 %v469_v43, %v434_v45  ;;  %v474_v60 = vadd.f32 %v470_v44, %v435_v46 }
  0xbc   : > { %v467_v37 = vpop.permute.xlu1 %466  ;;  %v432_v38 = vpop.permute.xlu0 %431 }
  0xbd   : > { %v471_v47 = vmul.f32 %v467_v37, %v454_v33  ;;  %v472_v48 = vmul.f32 %v467_v37, %v458_v34  ;;  %v436_v49 = vmul.f32 %v432_v38, %v419_v35  ;;  %v437_v50 = vmul.f32 %v432_v38, %v423_v36 }
  0xbf   : > { %v475_v61 = vadd.f32 %v471_v47, %v436_v49  ;;  %v476_v62 = vadd.f32 %v472_v48, %v437_v50 }
  0xc0   : > { %v506_v51 = vpop.permute.xlu1 %505  ;;  %v501_v52 = vpop.permute.xlu0 %500 }
  0xc1   : > { %v510_v55 = vmul.f32 %v506_v51, %v493_v39  ;;  %v511_v56 = vmul.f32 %v506_v51, %v497_v40  ;;  %v508_v57 = vmul.f32 %v501_v52, %v493_v39  ;;  %v509_v58 = vmul.f32 %v501_v52, %v497_v40 }
  0xc3   : > { %v514_v63 = vadd.f32 %v510_v55, %v475_v61  ;;  %v515_v0 = vadd.f32 %v511_v56, %v476_v62  ;;  %v512_v1 = vadd.f32 %v508_v57, %v473_v59  ;;  %v513_v2 = vadd.f32 %v509_v58, %v474_v60 }
  0xc4   : > { %v545_v3 = vpop.permute.xlu1 %544  ;;  %v540_v4 = vpop.permute.xlu0 %539 }
  0xc5   : > { %v549_v5 = vmul.f32 %v545_v3, %v532_v53  ;;  %v550_v6 = vmul.f32 %v545_v3, %v536_v54  ;;  %v547_v7 = vmul.f32 %v540_v4, %v532_v53  ;;  %v548_v8 = vmul.f32 %v540_v4, %v536_v54 }
  0xc7   : > { %v553_v9 = vadd.f32 %v549_v5, %v514_v63  ;;  %v554_v10 = vadd.f32 %v550_v6, %v515_v0  ;;  %v551_v11 = vadd.f32 %v547_v7, %v512_v1  ;;  %v552_v12 = vadd.f32 %v548_v8, %v513_v2  ;;  %v638_v6 = vld [vmem:[#allocation3 + $0x30] sm:$0xff]  ;;  %v639_v7 = vld [vmem:[#allocation3 + $0x38] sm:$0xff] }
  0xc8   : > { %v565_v13 = vpop.permute.xlu1 %564  ;;  %v560_v15 = vpop.permute.xlu0 %559  ;;  %v1869_v2 = vand.u32 127, %v406_v14  ;;  %v616_v14 = vld [vmem:[#allocation3 + $0x10] sm:$0xff] }
  0xc9   : > { %v569_v20 = vadd.f32 %v565_v13, %v553_v9  ;;  %v570_v23 = vadd.f32 %v565_v13, %v554_v10  ;;  %v567_v24 = vadd.f32 %v560_v15, %v551_v11  ;;  %v568_v25 = vadd.f32 %v560_v15, %v552_v12  ;;  %v617_v10 = vld [vmem:[#allocation3 + $0x18] sm:$0xff] }
  0xca   : > { %vm630_vm0 = vcmp.lt.s32.totalorder %v1869_v2, 16  ;;  %vm609_vm1 = vcmp.lt.s32.totalorder %v1869_v2, 17  ;;  %vm656_vm2 = vcmp.lt.s32.totalorder %v1869_v2, 15  ;;  %vm682_vm3 = vcmp.lt.s32.totalorder %v1869_v2, 1 }
  0xcb   : > { %v1352_v26 = vmul.f32 -1.442695, %v569_v20  ;;  %v1353_v27 = vmul.f32 -1.442695, %v570_v23  ;;  %v1350_v28 = vmul.f32 -1.442695, %v567_v24 }
  0xcc   : > { %v1351_v29 = vmul.f32 -1.442695, %v568_v25  ;;  %v1864_v48 = vpop.permute.xlu1 %826  ;;  %v1866_v49 = vpop.permute.xlu0 %821  ;;  %vm721_vm4 = vcmp.lt.s32.totalorder %v1869_v2, 127  ;;  %vm747_vm5 = vcmp.lt.s32.totalorder %v1869_v2, 113  ;;  %vm773_vm6 = vcmp.lt.s32.totalorder %v1869_v2, 112 }
  0xcd   : > { %1447 = vpow2.f32 %v1352_v26  ;;  %vm799_vm7 = vcmp.lt.s32.totalorder %v1869_v2, 111 }
  0xce   : > { %1449 = vpow2.f32 %v1353_v27 }
  0xcf   : > { %1451 = vpow2.f32 %v1350_v28 }
  0xd0   : > { %1453 = vpow2.f32 %v1351_v29 }
  0xd7   : > { %v1448_v30 = vpop.eup %1447 }
  0xd8   : > { %v1450_v33 = vpop.eup %1449  ;;  %v585_v34 = vadd.f32 1.0, %v1448_v30  ;;  %v636_v30 = vld [vmem:[#allocation3 + $0x20] sm:$0xff] }
  0xd9   : > { %v1452_v35 = vpop.eup %1451  ;;  %v586_v36 = vadd.f32 1.0, %v1450_v33  ;;  %v637_v33 = vld [vmem:[#allocation3 + $0x28] sm:$0xff] }
  0xda   : > { %v1454_v37 = vpop.eup %1453  ;;  %1455 = vrcp.f32 %v585_v34  ;;  %v583_v38 = vadd.f32 1.0, %v1452_v35 }
  0xdb   : > { %1457 = vrcp.f32 %v586_v36  ;;  %v584_v39 = vadd.f32 1.0, %v1454_v37  ;;  %v614_v36 = vld [vmem:[#allocation3] sm:$0xff] }
  0xdc   : > { %1459 = vrcp.f32 %v583_v38 }
  0xdd   : > { %1461 = vrcp.f32 %v584_v39  ;;  %v690_v39 = vld [vmem:[#allocation3 + $0x70] sm:$0xff] }
  0xe4   : > { %v1456_v40 = vpop.eup %1455 }
  0xe5   : > { %v1458_v41 = vpop.eup %1457  ;;  %v1824_v42 = vmul.f32 %v1456_v40, %v569_v20  ;;  %v691_v40 = vld [vmem:[#allocation3 + $0x78] sm:$0xff] }
  0xe6   : > { %v1460_v43 = vpop.eup %1459  ;;  %v1829_v46 = vmul.f32 %v1458_v41, %v570_v23  ;;  %v664_v23 = vld [vmem:[#allocation3 + $0x50] sm:$0xff] }
  0xe7   : > { %v1826_v44 = vmul.f32 %v1460_v43, %v567_v24  ;;  %601 = vrot.lane.b32.xlu1 %v1824_v42, %s1592_s15  ;;  %v1462_v45 = vpop.eup %1461  ;;  %v665_v24 = vld [vmem:[#allocation3 + $0x58] sm:$0xff] }
  0xe8   : > { %v1832_v47 = vmul.f32 %v1462_v45, %v568_v25 }
  0xe9   : > { %599 = vrot.lane.b32.xlu0 %v1826_v44, %s1592_s15 }
  0xeb   : > { %605 = vrot.lane.b32.xlu1 %v1829_v46, %s1592_s15 }
  0xed   : > { %603 = vrot.lane.b32.xlu0 %v1832_v47, %s1592_s15 }
  0xef   : > { %624 = vrot.lane.b32.xlu1 %v1824_v42, %s1593_s16 }
  0xf1   : > { %622 = vrot.lane.b32.xlu0 %v1826_v44, %s1593_s16 }
  0xf3   : > { %628 = vrot.lane.b32.xlu1 %v1829_v46, %s1593_s16 }
  0xf5   : > { %626 = vrot.lane.b32.xlu0 %v1832_v47, %s1593_s16 }
  0xf7   : > { %650 = vrot.lane.b32.xlu1 %v1824_v42, %s1594_s18 }
  0xf9   : > { %648 = vrot.lane.b32.xlu0 %v1826_v44, %s1594_s18 }
  0xfb   : > { %654 = vrot.lane.b32.xlu1 %v1829_v46, %s1594_s18 }
  0xfd   : > { %652 = vrot.lane.b32.xlu0 %v1832_v47, %s1594_s18 }
  0xff   : > { %676 = vrot.lane.b32.xlu1 %v1824_v42, %s1595_s23 }
 0x101   : > { %674 = vrot.lane.b32.xlu0 %v1826_v44, %s1595_s23 }
 0x103   : > { %680 = vrot.lane.b32.xlu1 %v1829_v46, %s1595_s23 }
 0x105   : > { %678 = vrot.lane.b32.xlu0 %v1832_v47, %s1595_s23 }
 0x107   : > { %715 = vrot.lane.b32.xlu1 %v1824_v42, %s1596_s17 }
 0x109   : > { %713 = vrot.lane.b32.xlu0 %v1826_v44, %s1596_s17 }
 0x10b   : > { %719 = vrot.lane.b32.xlu1 %v1829_v46, %s1596_s17 }
 0x10d   : > { %717 = vrot.lane.b32.xlu0 %v1832_v47, %s1596_s17  ;;  %s394_s17 = sand.u32 1, %s1578_s20  }
 0x10f   : > { %741 = vrot.lane.b32.xlu1 %v1824_v42, %s1597_s25 }
 0x111   : > { %739 = vrot.lane.b32.xlu0 %v1826_v44, %s1597_s25 }
 0x113   : > { %745 = vrot.lane.b32.xlu1 %v1829_v46, %s1597_s25 }
 0x115   : > { %743 = vrot.lane.b32.xlu0 %v1832_v47, %s1597_s25  ;;  %s1341_s25 = sshll.u32 %s394_s17, 3 }
 0x117   : > { %767 = vrot.lane.b32.xlu1 %v1824_v42, %s1598_s14 }
 0x119   : > { %765 = vrot.lane.b32.xlu0 %v1826_v44, %s1598_s14 }
 0x11b   : > { %771 = vrot.lane.b32.xlu1 %v1829_v46, %s1598_s14 }
 0x11d   : > { %769 = vrot.lane.b32.xlu0 %v1832_v47, %s1598_s14  ;;  %s1382_s14 = sshll.u32 %s1685_s6, 7  ;;  %s1600_s6 = smov [#allocation6]  }
 0x11e   : > { %s2121_s16 = scalar_lea.hbm %s2176_s11, %s1382_s14  ;;  %s1524_s23 = sshll.u32 %s1600_s6, 4  ;;  %s1525_s23 = int_to_ptr.vmem [resolvable:$false] %s1524_s23 }
 0x11f   : > { %793 = vrot.lane.b32.xlu1 %v1824_v42, %s1599_s26 }
 0x121   : > { %791 = vrot.lane.b32.xlu0 %v1826_v44, %s1599_s26 }
 0x123   : > { %797 = vrot.lane.b32.xlu1 %v1829_v46, %s1599_s26 }
 0x125   : > { %795 = vrot.lane.b32.xlu0 %v1832_v47, %s1599_s26  ;;  %s396_s26 = scalar_lea.vmem [#allocation6], %s1341_s25  ;;  %s1526_s25 = scalar_lea.vmem %s1525_s23, 256 }
 0x126   : > { %s1264_s30 = sshll.u32 %s396_s26, 4  ;;  %s2123_s30 = int_to_ptr.vmem [resolvable:$true] %s1264_s30 }
 0x127   : > { %s1520_s18 = scalar_lea.vmem %s2123_s30, 128  ;;  %p1527_p2 = scmp.lt.s32.totalorder %s2123_s30, %s1525_s23 }
 0x128   : > { %p1521_p6 = scmp.ne.s32.totalorder %s2123_s30, %s1520_s18  ;;  %p1528_p3 = scmp.lt.s32.totalorder %s1526_s25, %s1520_s18 }
 0x12a   : > { %p1522_p10 = pnand %p1521_p6, %p2187_p9  ;;  %p1529_p4 = por %p1528_p3, %p1527_p2 }
 0x12c   : > { %p1523_p12 = pneg %p1522_p10 }
 0x12e   : > { %p1530_p7 = pnand %p1529_p4, %p1523_p12 }
 0x159   : > { %v602_v50 = vpop.permute.xlu1 %601 }
 0x15b   : > { %v600_v51 = vpop.permute.xlu0 %599 }
 0x15d   : > { %v606_v52 = vpop.permute.xlu1 %605 }
 0x15e   : > { %v611_v11 = vsel %vm609_vm1, %v602_v50, %v606_v52  ;;  %v613_v12 = vsel %vm609_vm1, %v606_v52, %v602_v50  ;;  %v615_v50 = vld [vmem:[#allocation3 + $0x8] sm:$0xff] }
 0x15f   : > { %v604_v53 = vpop.permute.xlu0 %603  ;;  %v620_v28 = vmul.f32 %v616_v14, %v613_v12  ;;  %v621_v29 = vmul.f32 %v617_v10, %v611_v11  ;;  %v689_v14 = vld [vmem:[#allocation3 + $0x68] sm:$0xff] }
 0x160   : > { %v610_v37 = vsel %vm609_vm1, %v600_v51, %v604_v53  ;;  %v612_v38 = vsel %vm609_vm1, %v604_v53, %v600_v51 }
 0x161   : > { %v625_v54 = vpop.permute.xlu1 %624  ;;  %v618_v12 = vmul.f32 %v614_v36, %v612_v38 }
 0x163   : > { %v623_v55 = vpop.permute.xlu0 %622 }
 0x165   : > { %v629_v56 = vpop.permute.xlu1 %628 }
 0x166   : > { %v632_v8 = vsel %vm630_vm0, %v625_v54, %v629_v56  ;;  %v634_v9 = vsel %vm630_vm0, %v629_v56, %v625_v54  ;;  %v663_v56 = vld [vmem:[#allocation3 + $0x48] sm:$0xff] }
 0x167   : > { %v627_v57 = vpop.permute.xlu0 %626  ;;  %v642_v15 = vmul.f32 %v638_v6, %v634_v9  ;;  %v643_v20 = vmul.f32 %v639_v7, %v632_v8  ;;  %v703_v7 = vld [vmem:[#allocation3 + $0x90] sm:$0xff]  ;;  %v688_v9 = vld [vmem:[#allocation3 + $0x60] sm:$0xff] }
 0x168   : > { %v631_v34 = vsel %vm630_vm0, %v623_v55, %v627_v57  ;;  %v633_v35 = vsel %vm630_vm0, %v627_v57, %v623_v55  ;;  %v662_v55 = vld [vmem:[#allocation3 + $0x40] sm:$0xff] }
 0x169   : > { %v651_v58 = vpop.permute.xlu1 %650  ;;  %v646_v53 = vadd.f32 %v642_v15, %v620_v28  ;;  %v641_v6 = vmul.f32 %v637_v33, %v631_v34  ;;  %v701_v15 = vld [vmem:[#allocation3 + $0x80] sm:$0xff]  ;;  %v707_v28 = vmul.f32 %v703_v7, %v1824_v42  ;;  %v729_v42 = vld [vmem:[#allocation3 + $0xb0] sm:$0xff] }
 0x16b   : > { %v649_v59 = vpop.permute.xlu0 %648 }
 0x16d   : > { %v655_v60 = vpop.permute.xlu1 %654 }
 0x16e   : > { %v658_v25 = vsel %vm656_vm2, %v651_v58, %v655_v60  ;;  %v660_v26 = vsel %vm656_vm2, %v655_v60, %v651_v58  ;;  %v647_v58 = vadd.f32 %v643_v20, %v621_v29  ;;  %v640_v60 = vmul.f32 %v636_v30, %v633_v35  ;;  %v702_v29 = vld [vmem:[#allocation3 + $0x88] sm:$0xff] }
 0x16f   : > { %v653_v61 = vpop.permute.xlu0 %652  ;;  %v668_v52 = vmul.f32 %v664_v23, %v660_v26  ;;  %v669_v54 = vmul.f32 %v665_v24, %v658_v25  ;;  %v619_v23 = vmul.f32 %v615_v50, %v610_v37  ;;  %v705_v37 = vmul.f32 %v701_v15, %v1826_v44  ;;  %v730_v50 = vld [vmem:[#allocation3 + $0xb8] sm:$0xff]  ;;  %v780_v15 = vld [vmem:[#allocation3 + $0xe8] sm:$0xff] }
 0x170   : > { %v657_v57 = vsel %vm656_vm2, %v649_v59, %v653_v61  ;;  %v659_v51 = vsel %vm656_vm2, %v653_v61, %v649_v59  ;;  %v704_v61 = vld [vmem:[#allocation3 + $0x98] sm:$0xff]  ;;  %v644_v30 = vadd.f32 %v640_v60, %v618_v12  ;;  %v781_v12 = vld [vmem:[#allocation3 + $0xf0] sm:$0xff] }
 0x171   : > { %v677_v62 = vpop.permute.xlu1 %676  ;;  %v666_v24 = vmul.f32 %v662_v55, %v659_v51  ;;  %v667_v59 = vmul.f32 %v663_v56, %v657_v57  ;;  %v672_v25 = vadd.f32 %v668_v52, %v646_v53  ;;  %v673_v26 = vadd.f32 %v669_v54, %v647_v58  ;;  %v727_v54 = vld [vmem:[#allocation3 + $0xa0] sm:$0xff]  ;;  %v728_v55 = vld [vmem:[#allocation3 + $0xa8] sm:$0xff]  ;;  %v755_v53 = vld [vmem:[#allocation3 + $0xd0] sm:$0xff] }
 0x172   : > { %v645_v33 = vadd.f32 %v641_v6, %v619_v23  ;;  %v708_v36 = vmul.f32 %v704_v61, %v1829_v46  ;;  %v756_v58 = vld [vmem:[#allocation3 + $0xd8] sm:$0xff]  ;;  %v779_v61 = vld [vmem:[#allocation3 + $0xe0] sm:$0xff] }
 0x173   : > { %v675_v63 = vpop.permute.xlu0 %674  ;;  %v670_v38 = vadd.f32 %v666_v24, %v644_v30  ;;  %v782_v23 = vld [vmem:[#allocation3 + $0xf8] sm:$0xff] }
 0x175   : > { %v681_v0 = vpop.permute.xlu1 %680 }
 0x176   : > { %v684_v41 = vsel %vm682_vm3, %v677_v62, %v681_v0  ;;  %v686_v43 = vsel %vm682_vm3, %v681_v0, %v677_v62 }
 0x177   : > { %v679_v1 = vpop.permute.xlu0 %678  ;;  %v694_v62 = vmul.f32 %v690_v39, %v686_v43  ;;  %v695_v0 = vmul.f32 %v691_v40, %v684_v41  ;;  %v671_v40 = vadd.f32 %v667_v59, %v645_v33  ;;  %v706_v41 = vmul.f32 %v702_v29, %v1832_v47 }
 0x178   : > { %v683_v10 = vsel %vm682_vm3, %v675_v63, %v679_v1  ;;  %v685_v11 = vsel %vm682_vm3, %v679_v1, %v675_v63 }
 0x179   : > { %v1871_v3 = vpop.permute.xlu1 %715  ;;  %v692_v34 = vmul.f32 %v688_v9, %v685_v11  ;;  %v693_v35 = vmul.f32 %v689_v14, %v683_v10  ;;  %v698_v63 = vadd.f32 %v694_v62, %v672_v25  ;;  %v699_v1 = vadd.f32 %v695_v0, %v673_v26  ;;  %v753_v0 = vld [vmem:[#allocation3 + $0xc0] sm:$0xff]  ;;  %v754_v9 = vld [vmem:[#allocation3 + $0xc8] sm:$0xff] }
 0x17b   : > { %v1874_v4 = vpop.permute.xlu0 %713  ;;  %v696_v44 = vadd.f32 %v692_v34, %v670_v38  ;;  %v697_v47 = vadd.f32 %v693_v35, %v671_v40 }
 0x17d   : > { %v1877_v5 = vpop.permute.xlu1 %719  ;;  %v710_v26 = vadd.f32 %v706_v41, %v697_v47  ;;  %v806_v47 = vld [vmem:[#allocation3 + $0x108] sm:$0xff] }
 0x17e   : > { %v723_v52 = vsel %vm721_vm4, %v1871_v3, %v1877_v5  ;;  %v725_v46 = vsel %vm721_vm4, %v1877_v5, %v1871_v3  ;;  %v712_v3 = vadd.f32 %v708_v36, %v699_v1  ;;  %v711_v5 = vadd.f32 %v707_v28, %v698_v63 }
 0x17f   : > { %v1888_v13 = vpop.permute.xlu0 %717  ;;  %v733_v7 = vmul.f32 %v729_v42, %v723_v52  ;;  %v734_v62 = vmul.f32 %v730_v50, %v725_v46  ;;  %v709_v28 = vadd.f32 %v705_v37, %v696_v44  ;;  %v807_v42 = vld [vmem:[#allocation3 + $0x110] sm:$0xff]  ;;  %v808_v50 = vld [vmem:[#allocation3 + $0x118] sm:$0xff]  ;;  %v805_v44 = vld [vmem:[#allocation3 + $0x100] sm:$0xff] }
 0x180   : > { %v722_v56 = vsel %vm721_vm4, %v1874_v4, %v1888_v13  ;;  %v724_v57 = vsel %vm721_vm4, %v1888_v13, %v1874_v4 }
 0x181   : > { %v1895_v27 = vpop.permute.xlu1 %741  ;;  %v731_v10 = vmul.f32 %v727_v54, %v722_v56  ;;  %v732_v11 = vmul.f32 %v728_v55, %v724_v57  ;;  %v737_v33 = vadd.f32 %v733_v7, %v711_v5  ;;  %v738_v34 = vadd.f32 %v734_v62, %v712_v3 }
 0x183   : > { %v1909_v45 = vpop.permute.xlu0 %739  ;;  %v735_v1 = vadd.f32 %v731_v10, %v709_v28  ;;  %v736_v36 = vadd.f32 %v732_v11, %v710_v26 }
 0x185   : > { %v746_v8 = vpop.permute.xlu1 %745 }
 0x186   : > { %v749_v60 = vsel %vm747_vm5, %v1895_v27, %v746_v8  ;;  %v751_v6 = vsel %vm747_vm5, %v746_v8, %v1895_v27 }
 0x187   : > { %v744_v20 = vpop.permute.xlu0 %743  ;;  %v759_v24 = vmul.f32 %v755_v53, %v749_v60  ;;  %v760_v59 = vmul.f32 %v756_v58, %v751_v6 }
 0x188   : > { %v748_v4 = vsel %vm747_vm5, %v1909_v45, %v744_v20  ;;  %v750_v13 = vsel %vm747_vm5, %v744_v20, %v1909_v45 }
 0x189   : > { %v768_v39 = vpop.permute.xlu1 %767  ;;  %v757_v29 = vmul.f32 %v753_v0, %v748_v4  ;;  %v758_v30 = vmul.f32 %v754_v9, %v750_v13  ;;  %v763_v52 = vadd.f32 %v759_v24, %v737_v33  ;;  %v764_v46 = vadd.f32 %v760_v59, %v738_v34 }
 0x18b   : > { %v766_v43 = vpop.permute.xlu0 %765  ;;  %v762_v55 = vadd.f32 %v758_v30, %v736_v36  ;;  %v1362_v36 = vld [vmem:[%s2174_s9 + $0x8] sm:$0xf] }
 0x18d   : > { %v772_v51 = vpop.permute.xlu1 %771 }
 0x18e   : > { %v775_v27 = vsel %vm773_vm6, %v768_v39, %v772_v51  ;;  %v777_v8 = vsel %vm773_vm6, %v772_v51, %v768_v39 }
 0x18f   : > { %v770_v14 = vpop.permute.xlu0 %769  ;;  %v785_v35 = vmul.f32 %v781_v12, %v775_v27  ;;  %v786_v63 = vmul.f32 %v782_v23, %v777_v8 }
 0x190   : > { %v774_v25 = vsel %vm773_vm6, %v766_v43, %v770_v14  ;;  %v776_v45 = vsel %vm773_vm6, %v770_v14, %v766_v43  ;;  %v761_v43 = vadd.f32 %v757_v29, %v735_v1  ;;  %v931_v1 = vld [vmem:[%s2174_s9] sm:$0xf] }
 0x191   : > { %v794_v20 = vpop.permute.xlu1 %793  ;;  %v783_v38 = vmul.f32 %v779_v61, %v774_v25  ;;  %v784_v40 = vmul.f32 %v780_v15, %v776_v45  ;;  %v789_v56 = vadd.f32 %v785_v35, %v763_v52  ;;  %v790_v57 = vadd.f32 %v786_v63, %v764_v46  ;;  %v870_v52 = vld [vmem:[%s2170_s5] sm:$0xff] }
 0x193   : > { %v792_v39 = vpop.permute.xlu0 %791  ;;  %v787_v53 = vadd.f32 %v783_v38, %v761_v43  ;;  %v788_v58 = vadd.f32 %v784_v40, %v762_v55  ;;  %v1364_v38 = vld [vmem:[%s2174_s9 + $0x10] sm:$0xf]  ;;  %v871_v40 = vld [vmem:[%s2170_s5 + $0x8] sm:$0xff] }
 0x195   : > { %v798_v54 = vpop.permute.xlu1 %797 }
 0x196   : > { %v801_v37 = vsel %vm799_vm7, %v794_v20, %v798_v54  ;;  %v803_v41 = vsel %vm799_vm7, %v798_v54, %v794_v20 }
 0x197   : > { %v811_v51 = vmul.f32 %v807_v42, %v801_v37  ;;  %v812_v3 = vmul.f32 %v808_v50, %v803_v41  ;;  %v796_v5 = vpop.permute.xlu0 %795 }
 0x198   : > { %v800_v60 = vsel %vm799_vm7, %v792_v39, %v796_v5  ;;  %v802_v6 = vsel %vm799_vm7, %v796_v5, %v792_v39  ;;  %v884_v5 = vld [vmem:[#allocation2] sm:$0x1] }
 0x199   : > { %v815_v7 = vadd.f32 %v811_v51, %v789_v56  ;;  %v816_v62 = vadd.f32 %v812_v3, %v790_v57  ;;  %v809_v0 = vmul.f32 %v805_v44, %v800_v60  ;;  %v810_v9 = vmul.f32 %v806_v47, %v802_v6 }
 0x19b   : > { %v813_v4 = vadd.f32 %v809_v0, %v787_v53  ;;  %v814_v13 = vadd.f32 %v810_v9, %v788_v58  ;;  %v831_v14 = vadd.f32 %v1864_v48, %v815_v7  ;;  %v832_v10 = vadd.f32 %v1864_v48, %v816_v62  ;;  %v893_v9 = vld [vmem:[%s2172_s7] sm:$0xff] }
 0x19d   : > { %v1356_v11 = vmul.f32 -1.442695, %v831_v14  ;;  %v1357_v12 = vmul.f32 -1.442695, %v832_v10  ;;  %v829_v23 = vadd.f32 %v1866_v49, %v813_v4  ;;  %v830_v27 = vadd.f32 %v1866_v49, %v814_v13  ;;  %v894_v4 = vld [vmem:[%s2172_s7 + $0x8] sm:$0xff] }
 0x19f   : > { %1463 = vpow2.f32 %v1356_v11  ;;  %v1354_v8 = vmul.f32 -1.442695, %v829_v23  ;;  %v1355_v2 = vmul.f32 -1.442695, %v830_v27 }
 0x1a0   : > { %1465 = vpow2.f32 %v1357_v12 }
 0x1a1   : > { %1467 = vpow2.f32 %v1354_v8 }
 0x1a2   : > { %1469 = vpow2.f32 %v1355_v2 }
 0x1a9   : > { %v1464_v24 = vpop.eup %1463 }
 0x1aa   : > { %v1466_v59 = vpop.eup %1465  ;;  %v847_v61 = vadd.f32 1.0, %v1464_v24 }
 0x1ab   : > { %v1468_v15 = vpop.eup %1467  ;;  %v848_v25 = vadd.f32 1.0, %v1466_v59 }
 0x1ac   : > { %v1470_v45 = vpop.eup %1469  ;;  %1471 = vrcp.f32 %v847_v61  ;;  %v845_v48 = vadd.f32 1.0, %v1468_v15 }
 0x1ad   : > { %1473 = vrcp.f32 %v848_v25  ;;  %v846_v20 = vadd.f32 1.0, %v1470_v45 }
 0x1ae   : > { %1475 = vrcp.f32 %v845_v48  ;;  %v1361_v48 = vld [vmem:[%s2174_s9 + $0x4] sm:$0xf] }
 0x1af   : > { %1477 = vrcp.f32 %v846_v20  ;;  %v1367_v20 = vld [vmem:[%s2174_s9 + $0x1c] sm:$0xf] }
 0x1b6   : > { %v1472_v26 = vpop.eup %1471 }
 0x1b7   : > { %v1474_v49 = vpop.eup %1473  ;;  %v1975_v28 = vmul.f32 %v1472_v26, %v831_v14  ;;  %v901_v14 = vld [vmem:[%s2173_s8] sm:$0xff]  ;;  %v1363_v26 = vld [vmem:[%s2174_s9 + $0xc] sm:$0xf] }
 0x1b8   : > { %v1476_v29 = vpop.eup %1475  ;;  %v1977_v30 = vmul.f32 %v1474_v49, %v832_v10  ;;  %v902_v10 = vld [vmem:[%s2173_s8 + $0x8] sm:$0xff]  ;;  %v1369_v49 = vld [vmem:[%s2174_s9 + $0x24] sm:$0xf] }
 0x1b9   : > { %v1478_v33 = vpop.eup %1477  ;;  %v1979_v34 = vmul.f32 %v1476_v29, %v829_v23  ;;  %v1365_v29 = vld [vmem:[%s2174_s9 + $0x14] sm:$0xf] }
 0x1ba   : > { %v864_v35 = vadd.f32 %v1977_v30, %v1975_v28  ;;  %v1983_v63 = vmul.f32 %v1478_v33, %v830_v27  ;;  %v1371_v33 = vld [vmem:[%s2174_s9 + $0x2c] sm:$0xf] }
 0x1bc   : > { %865 = vadd.xlane.f32.xlu1 %v864_v35  ;;  %v861_v39 = vadd.f32 %v1983_v63, %v1979_v34  ;;  %v1366_v35 = vld [vmem:[%s2174_s9 + $0x18] sm:$0xf] }
 0x1be   : > { %862 = vadd.xlane.f32.xlu0 %v861_v39  ;;  %v1373_v39 = vld [vmem:[%s2174_s9 + $0x34] sm:$0xf] }
 0x1cd   : > { %942 = vperm.xlu1 %1445, %v931_v1   ;;  %v1368_v1 = vld [vmem:[%s2174_s9 + $0x20] sm:$0xf] }
 0x1d1   : > { %978 = vperm.xlu1 %1445, %v1362_v36   ;;  %v1375_v36 = vld [vmem:[%s2174_s9 + $0x3c] sm:$0xf] }
 0x1d5   : > { %1016 = vperm.xlu1 %1445, %v1364_v38   ;;  %v1370_v38 = vld [vmem:[%s2174_s9 + $0x28] sm:$0xf] }
 0x249   : > { %v866_v42 = vpop.xlane.xlu1 %865 }
 0x24a   : > { %v869_v50 = vmul.f32 0.00390625, %v866_v42  ;;  %v1374_v42 = vld [vmem:[%s2174_s9 + $0x38] sm:$0xf] }
 0x24b   : > { %v863_v46 = vpop.xlane.xlu0 %862 }
 0x24c   : > { %v873_v54 = vmul.f32 %v871_v40, %v869_v50  ;;  %v868_v43 = vmul.f32 0.00390625, %v863_v46  ;;  %v1372_v40 = vld [vmem:[%s2174_s9 + $0x30] sm:$0xf]  ;;  %v1232_v50 = vld [vmem:[%s2175_s10] sm:$0xf] }
 0x24e   : > { %v876_v55 = vsel %vm874_vm8, %v873_v54, 0.0  ;;  %v872_v37 = vmul.f32 %v870_v52, %v868_v43  ;;  %v943_v52 = vpop.permute.xlu1 %942 }
 0x250   : > { %v875_v41 = vsel %vm874_vm8, %v872_v37, 0.0 }
 0x251   : > { %v877_v44 = vadd.f32 %v876_v55, %v875_v41 }
 0x252   : > { %v979_v46 = vpop.permute.xlu1 %978 }
 0x253   : > { %v878_v47 = vrot.slane %v877_v44, 4 }
 0x255   : > { %v879_v56 = vadd.f32 %v878_v47, %v877_v44 }
 0x256   : > { %v1017_v54 = vpop.permute.xlu1 %1016 }
 0x257   : > { %v880_v57 = vrot.slane %v879_v56, 2 }
 0x259   : > { %v881_v51 = vadd.f32 %v880_v57, %v879_v56 }
 0x25b   : > { %v882_v3 = vrot.slane %v881_v51, 1 }
 0x25d   : > { %v883_v53 = vadd.f32 %v882_v3, %v881_v51 }
 0x25f   : > { %v885_v58 = vadd.f32 %v884_v5, %v883_v53 }
 0x261   : > { %v1358_v60 = vmul.f32 -1.442695, %v885_v58 }
 0x263   : > { %1479 = vpow2.f32 %v1358_v60 }
 0x26d   : > { %v1480_v6 = vpop.eup %1479 }
 0x26e   : > { %v889_v7 = vadd.f32 1.0, %v1480_v6 }
 0x270   : > { %1481 = vrcp.f32 %v889_v7 }
 0x27a   : > { %v1482_v62 = vpop.eup %1481 }
 0x27b   : > { %v892_v0 = vmul.f32 %v1482_v62, %v885_v58 }
 0x27d   : > { %v898_v13 = vrot.slane %v892_v0, %v1795_v18 }
 0x27f   : > { %v899_v11 = vmul.f32 %v898_v13, %v893_v9  ;;  %v900_v12 = vmul.f32 %v898_v13, %v894_v4 }
 0x281   : > { %v903_v23 = vadd.f32 %v901_v14, %v899_v11  ;;  %v904_v27 = vadd.f32 %v902_v10, %v900_v12 }
 0x283   : > { %v1359_v8 = vmul.f32 -1.442695, %v903_v23  ;;  %v1360_v2 = vmul.f32 -1.442695, %v904_v27 }
 0x285   : > { %1483 = vpow2.f32 %v1359_v8 }
 0x286   : > { %1485 = vpow2.f32 %v1360_v2 }
 0x28f   : > { %v1484_v24 = vpop.eup %1483 }
 0x290   : > { %v1486_v59 = vpop.eup %1485  ;;  %v911_v61 = vadd.f32 1.0, %v1484_v24 }
 0x291   : > { %v912_v15 = vadd.f32 1.0, %v1486_v59 }
 0x292   : > { %1487 = vrcp.f32 %v911_v61 }
 0x293   : > { %1489 = vrcp.f32 %v912_v15 }
 0x29c   : > { %v1488_v25 = vpop.eup %1487 }
 0x29d   : > { %v1490_v45 = vpop.eup %1489  ;;  %919 = vperm.xlu0 %1444, %v1488_v25  }
 0x29e   : > { %924 = vperm.xlu1 %1445, %v1490_v45  }
 0x2a1   : > { %959 = vperm.xlu0 %1444, %v1361_v48  }
 0x2a2   : > { %1073 = vperm.xlu1 %1445, %v1367_v20  }
 0x2a5   : > { %997 = vperm.xlu0 %1444, %v1363_v26  }
 0x2a6   : > { %1111 = vperm.xlu1 %1445, %v1369_v49  }
 0x2a9   : > { %1035 = vperm.xlu0 %1444, %v1365_v29  }
 0x2aa   : > { %1149 = vperm.xlu1 %1445, %v1371_v33  }
 0x2ad   : > { %1054 = vperm.xlu0 %1444, %v1366_v35  }
 0x2ae   : > { %1187 = vperm.xlu1 %1445, %v1373_v39  }
 0x2b1   : > { %1092 = vperm.xlu0 %1444, %v1368_v1  }
 0x2b2   : > { %1225 = vperm.xlu1 %1445, %v1375_v36  }
 0x2b5   : > { %1130 = vperm.xlu0 %1444, %v1370_v38  }
 0x2b9   : > { %1168 = vperm.xlu0 %1444, %v1372_v40  }
 0x2bd   : > { %1206 = vperm.xlu0 %1444, %v1374_v42  }
 0x2c1   : > { %1235 = vperm.xlu0 %1444, %v1232_v50  }
 0x31c   : > { %v920_v43 = vpop.permute.xlu0 %919 }
 0x31d   : > { %v927_v55 = vmul.f32 %v920_v43, %v1979_v34  ;;  %v928_v37 = vmul.f32 %v920_v43, %v1983_v63  ;;  %v925_v41 = vpop.permute.xlu1 %924 }
 0x31e   : > { %v2074_v35 = vmul.f32 %v925_v41, %v1975_v28  ;;  %v2077_v39 = vmul.f32 %v925_v41, %v1977_v30 }
 0x31f   : > { %v935_v44 = vrot.slane %v927_v55, %v1795_v18  ;;  %v939_v47 = vrot.slane %v928_v37, %v1795_v18  ;;  %v952_v56 = vrot.slane %v927_v55, %v1791_v16  ;;  %v956_v57 = vrot.slane %v928_v37, %v1791_v16 }
 0x320   : > { %v960_v51 = vpop.permute.xlu0 %959  ;;  %v971_v53 = vrot.slane %v927_v55, %v1800_v21  ;;  %v975_v58 = vrot.slane %v928_v37, %v1800_v21  ;;  %v990_v63 = vrot.slane %v927_v55, %v1810_v31  ;;  %v994_v6 = vrot.slane %v928_v37, %v1810_v31 }
 0x321   : > { %v945_v3 = vmul.f32 %v943_v52, %v935_v44  ;;  %v946_v5 = vmul.f32 %v943_v52, %v939_v47  ;;  %v962_v60 = vmul.f32 %v960_v51, %v952_v56  ;;  %v963_v34 = vmul.f32 %v960_v51, %v956_v57  ;;  %v1074_v7 = vpop.permute.xlu1 %1073 }
 0x322   : > { %v981_v9 = vmul.f32 %v979_v46, %v971_v53  ;;  %v982_v4 = vmul.f32 %v979_v46, %v975_v58  ;;  %v1009_v11 = vrot.slane %v927_v55, %v1797_v19  ;;  %v1013_v12 = vrot.slane %v928_v37, %v1797_v19 }
 0x323   : > { %v964_v62 = vadd.f32 %v962_v60, %v945_v3  ;;  %v965_v0 = vadd.f32 %v963_v34, %v946_v5  ;;  %v1028_v8 = vrot.slane %v927_v55, %v1793_v17  ;;  %v1032_v2 = vrot.slane %v928_v37, %v1793_v17 }
 0x324   : > { %v998_v13 = vpop.permute.xlu0 %997  ;;  %v1019_v61 = vmul.f32 %v1017_v54, %v1009_v11  ;;  %v1020_v15 = vmul.f32 %v1017_v54, %v1013_v12  ;;  %v1066_v20 = vrot.slane %v927_v55, %v1812_v32  ;;  %v1070_v26 = vrot.slane %v928_v37, %v1812_v32 }
 0x325   : > { %v1000_v14 = vmul.f32 %v998_v13, %v990_v63  ;;  %v1001_v10 = vmul.f32 %v998_v13, %v994_v6  ;;  %v983_v23 = vadd.f32 %v981_v9, %v964_v62  ;;  %v984_v27 = vadd.f32 %v982_v4, %v965_v0  ;;  %v1112_v49 = vpop.permute.xlu1 %1111 }
 0x326   : > { %v1047_v1 = vrot.slane %v927_v55, %v1802_v22  ;;  %v1051_v36 = vrot.slane %v928_v37, %v1802_v22  ;;  %v1076_v46 = vmul.f32 %v1074_v7, %v1066_v20  ;;  %v1077_v54 = vmul.f32 %v1074_v7, %v1070_v26 }
 0x327   : > { %v1002_v24 = vadd.f32 %v1000_v14, %v983_v23  ;;  %v1003_v59 = vadd.f32 %v1001_v10, %v984_v27  ;;  %v1085_v28 = vrot.slane %v2074_v35, %v1795_v18  ;;  %v1089_v30 = vrot.slane %v2077_v39, %v1795_v18 }
 0x328   : > { %v1036_v25 = vpop.permute.xlu0 %1035  ;;  %v1104_v55 = vrot.slane %v2074_v35, %v1791_v16  ;;  %v1108_v37 = vrot.slane %v2077_v39, %v1791_v16  ;;  %v1123_v34 = vrot.slane %v2074_v35, %v1800_v21  ;;  %v1127_v18 = vrot.slane %v2077_v39, %v1800_v21 }
 0x329   : > { %v1038_v45 = vmul.f32 %v1036_v25, %v1028_v8  ;;  %v1039_v48 = vmul.f32 %v1036_v25, %v1032_v2  ;;  %v1021_v29 = vadd.f32 %v1019_v61, %v1002_v24  ;;  %v1022_v33 = vadd.f32 %v1020_v15, %v1003_v59  ;;  %v1150_v41 = vpop.permute.xlu1 %1149 }
 0x32a   : > { %v1114_v5 = vmul.f32 %v1112_v49, %v1104_v55  ;;  %v1115_v53 = vmul.f32 %v1112_v49, %v1108_v37  ;;  %v1142_v63 = vrot.slane %v2074_v35, %v1810_v31  ;;  %v1146_v16 = vrot.slane %v2077_v39, %v1810_v31 }
 0x32b   : > { %v1040_v40 = vadd.f32 %v1038_v45, %v1021_v29  ;;  %v1041_v42 = vadd.f32 %v1039_v48, %v1022_v33  ;;  %v1161_v21 = vrot.slane %v2074_v35, %v1797_v19  ;;  %v1165_v12 = vrot.slane %v2077_v39, %v1797_v19 }
 0x32c   : > { %v1055_v38 = vpop.permute.xlu0 %1054  ;;  %v1152_v4 = vmul.f32 %v1150_v41, %v1142_v63  ;;  %v1153_v13 = vmul.f32 %v1150_v41, %v1146_v16  ;;  %v1180_v31 = vrot.slane %v2074_v35, %v1793_v17  ;;  %v1184_v23 = vrot.slane %v2077_v39, %v1793_v17 }
 0x32d   : > { %v1057_v50 = vmul.f32 %v1055_v38, %v1047_v1  ;;  %v1058_v52 = vmul.f32 %v1055_v38, %v1051_v36  ;;  %v1188_v14 = vpop.permute.xlu1 %1187  ;;  %v1199_v48 = vrot.slane %v2074_v35, %v1802_v22  ;;  %v1203_v19 = vrot.slane %v2077_v39, %v1802_v22 }
 0x32e   : > { %v1190_v61 = vmul.f32 %v1188_v14, %v1180_v31  ;;  %v1191_v15 = vmul.f32 %v1188_v14, %v1184_v23  ;;  %v1218_v17 = vrot.slane %v2074_v35, %v1812_v32  ;;  %v1222_v20 = vrot.slane %v2077_v39, %v1812_v32  ;;  %v1491_v35 = vld [vmem:[%s1789_s12] sm:$0xff]  ;;  %s1250_s12 = scalar_lea.sflag [#allocation5], %s394_s17 }
 0x32f   : > { %v1059_v43 = vadd.f32 %v1057_v50, %v1040_v40  ;;  %v1060_v44 = vadd.f32 %v1058_v52, %v1041_v42 }
 0x330   : > { %v1093_v47 = vpop.permute.xlu0 %1092 }
 0x331   : > { %v1078_v56 = vadd.f32 %v1076_v46, %v1059_v43  ;;  %v1079_v57 = vadd.f32 %v1077_v54, %v1060_v44  ;;  %v1095_v51 = vmul.f32 %v1093_v47, %v1085_v28  ;;  %v1096_v3 = vmul.f32 %v1093_v47, %v1089_v30  ;;  %v1226_v26 = vpop.permute.xlu1 %1225 }
 0x332   : > { %v1228_v38 = vmul.f32 %v1226_v26, %v1218_v17  ;;  %v1229_v40 = vmul.f32 %v1226_v26, %v1222_v20  ;;  %v1240_v46 = vcombine.high %v1491_v35, %v1491_v35 }
 0x333   : > { %v1097_v58 = vadd.f32 %v1095_v51, %v1078_v56  ;;  %v1098_v60 = vadd.f32 %v1096_v3, %v1079_v57 }
 0x334   : > { %v1131_v6 = vpop.permute.xlu0 %1130 }
 0x335   : > { %v1116_v7 = vadd.f32 %v1114_v5, %v1097_v58  ;;  %v1117_v62 = vadd.f32 %v1115_v53, %v1098_v60  ;;  %v1133_v0 = vmul.f32 %v1131_v6, %v1123_v34  ;;  %v1134_v9 = vmul.f32 %v1131_v6, %v1127_v18 }
 0x337   : > { %v1135_v10 = vadd.f32 %v1133_v0, %v1116_v7  ;;  %v1136_v11 = vadd.f32 %v1134_v9, %v1117_v62 }
 0x338   : > { %v1169_v27 = vpop.permute.xlu0 %1168 }
 0x339   : > { %v1154_v8 = vadd.f32 %v1152_v4, %v1135_v10  ;;  %v1155_v2 = vadd.f32 %v1153_v13, %v1136_v11  ;;  %v1171_v24 = vmul.f32 %v1169_v27, %v1161_v21  ;;  %v1172_v59 = vmul.f32 %v1169_v27, %v1165_v12 }
 0x33b   : > { %v1173_v25 = vadd.f32 %v1171_v24, %v1154_v8  ;;  %v1174_v45 = vadd.f32 %v1172_v59, %v1155_v2 }
 0x33c   : > { %v1207_v49 = vpop.permute.xlu0 %1206 }
 0x33d   : > { %v1192_v29 = vadd.f32 %v1190_v61, %v1173_v25  ;;  %v1193_v33 = vadd.f32 %v1191_v15, %v1174_v45  ;;  %v1209_v1 = vmul.f32 %v1207_v49, %v1199_v48  ;;  %v1210_v36 = vmul.f32 %v1207_v49, %v1203_v19 }
 0x33f   : > { %v1211_v22 = vadd.f32 %v1209_v1, %v1192_v29  ;;  %v1212_v42 = vadd.f32 %v1210_v36, %v1193_v33 }
 0x340   : > { %v1236_v32 = vpop.permute.xlu0 %1235 }
 0x341   : > { %v1230_v50 = vadd.f32 %v1228_v38, %v1211_v22  ;;  %v1231_v52 = vadd.f32 %v1229_v40, %v1212_v42 }
 0x343   : > { %v1238_v39 = vadd.f32 %v1236_v32, %v1230_v50  ;;  %v1239_v54 = vadd.f32 %v1236_v32, %v1231_v52 }
 0x345   : > { %v1242_v43 = vadd.f32 %v1491_v35, %v1238_v39  ;;  %v1243_v44 = vadd.f32 %v1240_v46, %v1239_v54 }
 0x347   : > { %v1246_v28 = vcombine.low %v1242_v43, %v1243_v44 }
 0x349   : > { %1248 = vst [vmem:[%s396_s26] sm:$0xff] %v1246_v28 }
 0x34a   : > { %1533 = shalt.err (!%p1530_p7)
}
 0x34b   : > { %s1534_s17 = scalar_lea.hbm %s2121_s16, 128  ;;  %s1538_s13 = scalar_lea.hbm %s2176_s11, 256 }
 0x34c   : > { %p1535_p8 = scmp.ne.s32.totalorder %s2121_s16, %s1534_s17  ;;  %p1539_p1 = scmp.lt.u32.totalorder %s2121_s16, %s2176_s11 }
 0x34d   : > { %p1540_p0 = scmp.lt.u32.totalorder %s1538_s13, %s1534_s17  ;;  %p1542_p6 = scmp.lt.u32.totalorder %s1534_s17, %s2121_s16 }
 0x34e   : > { %p1536_p11 = pnand %p1535_p8, %p2187_p9 }
 0x34f   : > { %p1541_p5 = por %p1540_p0, %p1539_p1 }
 0x350   : > { %p1537_p13 = pneg %p1536_p11 }
 0x351   : > { %p1543_p10 = por %p1542_p6, %p1541_p5 }
 0x353   : > { %p1544_p12 = pnand %p1543_p10, %p1537_p13 }
 0x355   : > { %1547 = shalt.err (!%p1544_p12)
}
 0x356   : > { %1387 = dma.vmem_to_hbm [thread:$0]  (%p2187_p9), %s2123_s30, 128, %s2121_s16, %s1250_s12  }
 0x357 PF: > { %p1399_p2 = scmp.ge.s32.totalorder %s1586_s22, 2  ;;  %s1276_s18 = sand.u32 1, %s1574_s19  }
 0x358   : > { %p2188_p3 = scmp.ne.s32.totalorder %s2181_s29, 0  ;;  %s1277_s23 = scalar_lea.sflag [#allocation5], %s1276_s18 }
 0x35a   : > { %p1394_p4 = pnand %p1399_p2, %p2188_p3 }
 0x35c   : > { %1569 = dma.done.wait (!%p1394_p4), %s1277_s23, 128  }
 0x35d   : > { %1571 = vsyncadd (!%p1394_p4), %s1277_s23, 4294967168  ;;  %p24_p7 = scmp.ge.s32.totalorder %s1689_s24, 4   ;;  %s2189_s19 = smov %s1578_s20 }
 0x35e   : > { %s2190_s20 = smov %s1582_s21  ;;  %s2191_s21 = smov %s1700_s27 }
 0x35f   : > { %s2192_s22 = smov %s1689_s24  ;;  %26 = sbr.rel (!%p24_p7) target bundleno = 7 (0x7), region = 130 }
 0x366   :  { %1282 = vsyncpa [#allocation4], 1 }
 0x367   :  { %1284 = vsyncpa [#allocation4 + $0x1], 1 }
 0x368   :  { %1285 = vsyncpa [#allocation5], 1 }
 0x369   :  { %1287 = vsyncpa [#allocation5 + $0x1], 1 }

</bundles_post_ra>
